<compile_context>
chip_gen: v6e
topology: v6e:2x2x1
jax: 0.10.0
libtpu: 0.0.40
codegen_flags: <defaults>
</compile_context>

<pallas_src>
import jax
import jax.numpy as jnp
from jax.experimental import pallas as pl
from jax.experimental.pallas import tpu as pltpu

EPS = 1e-5


def _round_up(n, m):
    return ((n + m - 1) // m) * m


# ---------------------------------------------------------------------------
# Kernel: three MXU dots (bf16 inputs, f32 accumulation) + two f32 PReLUs.
# ---------------------------------------------------------------------------
def baseline_kernel(alpha_ref,                       # (2,) f32 in SMEM (scalar prefetch)
                    x_ref,                           # (bt, D_in)  f32
                    w1_ref, b1_ref,                  # (D_in, H1) bf16, (1, H1) f32
                    w2_ref, b2_ref,                  # (H1, H2)  bf16, (1, H2) f32
                    w3_ref, b3_ref,                  # (H2, Cp)  bf16, (1, Cp) f32
                    o_ref):                          # (bt, Cp)  f32
    # fc1 (+ folded bn1) + PReLU   (dropout is identity in eval mode)
    h = jnp.dot(x_ref[...].astype(jnp.bfloat16), w1_ref[...],
                preferred_element_type=jnp.float32) + b1_ref[...]
    h = jnp.where(h >= 0, h, alpha_ref[0] * h)

    # fc2 (+ folded bn2) + PReLU
    h = jnp.dot(h.astype(jnp.bfloat16), w2_ref[...],
                preferred_element_type=jnp.float32) + b2_ref[...]
    h = jnp.where(h >= 0, h, alpha_ref[1] * h)

    # fc3 (+ folded bn3)  -- no sigmoid in forward
    h = jnp.dot(h.astype(jnp.bfloat16), w3_ref[...],
                preferred_element_type=jnp.float32) + b3_ref[...]

    o_ref[...] = h.astype(o_ref.dtype)


# ---------------------------------------------------------------------------
# Wrapper-side algebra: fold eval-mode BN + bias into the Linear weights.
# ---------------------------------------------------------------------------
def fold_params(p):
    """Fold BN (running stats) into each Linear; weights -> bf16, biases -> f32."""
    def fold(w, b, g, be, m, v):
        scale = g * jax.lax.rsqrt(v + EPS)                    # (1, out)
        w_f = (w * scale).astype(jnp.bfloat16)                # (in, out)
        b_f = ((b - m) * scale + be).astype(jnp.float32)      # (1, out)
        return w_f, b_f

    w1, b1 = fold(p["w1"], p["b1"], p["g1"], p["be1"], p["m1"], p["v1"])
    w2, b2 = fold(p["w2"], p["b2"], p["g2"], p["be2"], p["m2"], p["v2"])
    w3, b3 = fold(p["w3"], p["b3"], p["g3"], p["be3"], p["m3"], p["v3"])
    alphas = jnp.concatenate(
        [p["a1"].reshape(-1), p["a2"].reshape(-1)]).astype(jnp.float32)  # (2,)
    return dict(w1=w1, b1=b1, w2=w2, b2=b2, w3=w3, b3=b3, alphas=alphas)


def baseline_model1_forward(x, params, *, max_batch_tile=256):
    """x: (B, inputsize) f32. params: raw parameter dict (see init_params)."""
    B, D_in = x.shape
    fp = fold_params(params)
    H1 = fp["w1"].shape[1]
    H2 = fp["w2"].shape[1]
    C = fp["w3"].shape[1]

    # Pad num_classes to a multiple of 128 so output stores are lane-dense.
    Cp = _round_up(C, 128)
    w3, b3 = fp["w3"], fp["b3"]
    if Cp != C:
        w3 = jnp.pad(w3, ((0, 0), (0, Cp - C)))
        b3 = jnp.pad(b3, ((0, 0), (0, Cp - C)))

    # Batch tiling: single grid step for small B; 256-row tiles (MXU row width)
    # otherwise. Pad the batch instead of asserting divisibility.
    if B <= max_batch_tile:
        bt = _round_up(B, 8)
        Bp = bt
    else:
        bt = max_batch_tile
        Bp = _round_up(B, bt)
    xp = jnp.pad(x, ((0, Bp - B), (0, 0))) if Bp != B else x

    # Weight / bias blocks are grid-invariant (index_map -> (0,0)); only x and
    # the output are tiled over the batch axis. Scalar-prefetch ref (alphas)
    # arrives as the trailing positional arg of every index_map.
    in_specs = [
        pl.BlockSpec((bt, D_in), lambda i, a: (i, 0)),   # x
        pl.BlockSpec((D_in, H1), lambda i, a: (0, 0)),   # w1 (folded, bf16)
        pl.BlockSpec((1, H1),    lambda i, a: (0, 0)),   # b1 (folded, f32)
        pl.BlockSpec((H1, H2),   lambda i, a: (0, 0)),   # w2
        pl.BlockSpec((1, H2),    lambda i, a: (0, 0)),   # b2
        pl.BlockSpec((H2, Cp),   lambda i, a: (0, 0)),   # w3
        pl.BlockSpec((1, Cp),    lambda i, a: (0, 0)),   # b3
    ]
    out_specs = pl.BlockSpec((bt, Cp), lambda i, a: (i, 0))

    out = pl.pallas_call(
        baseline_kernel,
        out_shape=jax.ShapeDtypeStruct((Bp, Cp), jnp.float32),
        grid_spec=pltpu.PrefetchScalarGridSpec(
            num_scalar_prefetch=1,            # alphas -> SMEM scalars
            grid=(Bp // bt,),
            in_specs=in_specs,
            out_specs=out_specs,
        ),
        compiler_params=pltpu.CompilerParams(
            dimension_semantics=("parallel",),
        ),
    )(fp["alphas"], xp, fp["w1"], fp["b1"], fp["w2"], fp["b2"], w3, b3)

    return out[:B, :C]


# ---------------------------------------------------------------------------
# Parameter init (PyTorch-like shapes; Linear weights pre-transposed (in,out)).
# ---------------------------------------------------------------------------
def init_params(key, inputsize, num_classes):
    H1, H2, C = 1024, 512, num_classes
    keys = jax.random.split(key, 12)

    def lin(kw, kb, fan_in, fan_out):
        bound = 1.0 / jnp.sqrt(fan_in)
        w = jax.random.uniform(kw, (fan_in, fan_out), jnp.float32, -bound, bound)
        b = jax.random.uniform(kb, (1, fan_out), jnp.float32, -bound, bound)
        return w, b

    def bn(kg, kb, dim):
        g = jnp.ones((1, dim), jnp.float32) + 0.01 * jax.random.normal(kg, (1, dim))
        be = 0.01 * jax.random.normal(kb, (1, dim))
        m = jnp.zeros((1, dim), jnp.float32)
        v = jnp.ones((1, dim), jnp.float32)
        return g, be, m, v

    w1, b1 = lin(keys[0], keys[1], inputsize, H1)
    w2, b2 = lin(keys[2], keys[3], H1, H2)
    w3, b3 = lin(keys[4], keys[5], H2, C)
    g1, be1, m1, v1 = bn(keys[6], keys[7], H1)
    g2, be2, m2, v2 = bn(keys[8], keys[9], H2)
    g3, be3, m3, v3 = bn(keys[10], keys[11], C)

    a = jnp.full((1, 1), 0.25, jnp.float32)  # PReLU default init

    return dict(
        w1=w1, b1=b1, g1=g1, be1=be1, m1=m1, v1=v1, a1=a,
        w2=w2, b2=b2, g2=g2, be2=be2, m2=m2, v2=v2, a2=a,
        w3=w3, b3=b3, g3=g3, be3=be3, m3=m3, v3=v3,
    )


# ---------------------------------------------------------------------------
# References.
# ---------------------------------------------------------------------------
def reference_forward_f32(x, p):
    """Pure-JAX f32 reference of the eval-mode PyTorch forward (un-folded BN)."""
    def bn(h, g, be, m, v):
        return (h - m) * jax.lax.rsqrt(v + EPS) * g + be

    def prelu(h, a):
        return jnp.where(h >= 0, h, a[0, 0] * h)

    h = x @ p["w1"] + p["b1"]
    h = prelu(bn(h, p["g1"], p["be1"], p["m1"], p["v1"]), p["a1"])
    h = h @ p["w2"] + p["b2"]
    h = prelu(bn(h, p["g2"], p["be2"], p["m2"], p["v2"]), p["a2"])
    h = h @ p["w3"] + p["b3"]
    h = bn(h, p["g3"], p["be3"], p["m3"], p["v3"])
    return h


def reference_forward_folded(x, fp):
    """Pure-JAX reference using the exact folded bf16 weights the kernel uses."""
    h = jnp.dot(x.astype(jnp.bfloat16), fp["w1"],
                preferred_element_type=jnp.float32) + fp["b1"]
    h = jnp.where(h >= 0, h, fp["alphas"][0] * h)
    h = jnp.dot(h.astype(jnp.bfloat16), fp["w2"],
                preferred_element_type=jnp.float32) + fp["b2"]
    h = jnp.where(h >= 0, h, fp["alphas"][1] * h)
    h = jnp.dot(h.astype(jnp.bfloat16), fp["w3"],
                preferred_element_type=jnp.float32) + fp["b3"]
    return h


if __name__ == "__main__":
    key = jax.random.PRNGKey(0)
    k_x, k_p = jax.random.split(key)

    B = 16           # batch
    INPUTSIZE = 256  # feature dim fed to fc1
    NUM_CLASSES = 4

    x = jax.random.normal(k_x, (B, INPUTSIZE), dtype=jnp.float32)
    params = init_params(k_p, INPUTSIZE, NUM_CLASSES)

    out = baseline_model1_forward(x, params)
    out = jax.block_until_ready(out)
    assert out.shape == (B, NUM_CLASSES)

    # 1) Exact-weights check: kernel vs JAX with the same folded bf16 weights.
    fp = fold_params(params)
    ref_matched = reference_forward_folded(x, fp)
    assert jnp.allclose(out, ref_matched, atol=1e-3, rtol=1e-3), \
        "mismatch vs folded-bf16 JAX reference"

    # 2) Sanity check vs the full-precision un-folded eval-mode reference;
    #    slack accounts only for bf16 weight/activation quantization.
    ref_f32 = reference_forward_f32(x, params)
    assert jnp.allclose(out, ref_f32, atol=1e-1), \
        "mismatch vs f32 eval-mode reference beyond bf16 quantization error"

    print("KERNEL_OK")
</pallas_src>

<mosaic_0001>
module attributes {stable_mosaic.version = 11 : i64} {
  func.func @baseline_kernel(%arg0: i32, %arg1: memref<2xf32, #tpu.memory_space<smem>>, %arg2: memref<16x256xf32, #tpu.memory_space<vmem>>, %arg3: memref<256x1024xbf16, #tpu.memory_space<vmem>>, %arg4: memref<1x1024xf32, #tpu.memory_space<vmem>>, %arg5: memref<1024x512xbf16, #tpu.memory_space<vmem>>, %arg6: memref<1x512xf32, #tpu.memory_space<vmem>>, %arg7: memref<512x128xbf16, #tpu.memory_space<vmem>>, %arg8: memref<1x128xf32, #tpu.memory_space<vmem>>, %arg9: memref<16x128xf32, #tpu.memory_space<vmem>>) attributes {dimension_semantics = [#tpu.dimension_semantics<parallel>], iteration_bounds = array<i64: 1>, scalar_prefetch = 1 : i64, scratch_operands = 0 : i64, tpu.core_type = #tpu.core_type<tc>, window_params = [{transform_indices = @transform_0, window_bounds = array<i64: 16, 256>}, {pipeline_mode = #tpu.pipeline_mode<synchronous>, transform_indices = @transform_1, window_bounds = array<i64: 256, 1024>}, {pipeline_mode = #tpu.pipeline_mode<synchronous>, transform_indices = @transform_2, window_bounds = array<i64: 1, 1024>}, {pipeline_mode = #tpu.pipeline_mode<synchronous>, transform_indices = @transform_3, window_bounds = array<i64: 1024, 512>}, {pipeline_mode = #tpu.pipeline_mode<synchronous>, transform_indices = @transform_4, window_bounds = array<i64: 1, 512>}, {pipeline_mode = #tpu.pipeline_mode<synchronous>, transform_indices = @transform_5, window_bounds = array<i64: 512, 128>}, {pipeline_mode = #tpu.pipeline_mode<synchronous>, transform_indices = @transform_6, window_bounds = array<i64: 1, 128>}, {transform_indices = @transform_7, window_bounds = array<i64: 16, 128>}]} {
    %c0 = arith.constant 0 : index
    %c0_0 = arith.constant 0 : index
    %0 = vector.load %arg2[%c0, %c0_0] : memref<16x256xf32, #tpu.memory_space<vmem>>, vector<16x256xf32>
    %1 = arith.truncf %0 : vector<16x256xf32> to vector<16x256xbf16>
    %c0_1 = arith.constant 0 : index
    %c0_2 = arith.constant 0 : index
    %2 = vector.load %arg3[%c0_1, %c0_2] : memref<256x1024xbf16, #tpu.memory_space<vmem>>, vector<256x1024xbf16>
    %cst = arith.constant dense<0.000000e+00> : vector<16x1024xf32>
    %3 = tpu.matmul %1, %2, %cst {dimension_numbers = #tpu.dot_dimension_numbers<[1], [0], [0], [1], [0, 0, 1, 1], [], []>} : vector<16x256xbf16>, vector<256x1024xbf16>, vector<16x1024xf32> -> vector<16x1024xf32>
    %c0_3 = arith.constant 0 : index
    %c0_4 = arith.constant 0 : index
    %4 = vector.load %arg4[%c0_3, %c0_4] : memref<1x1024xf32, #tpu.memory_space<vmem>>, vector<1x1024xf32>
    %5 = vector.broadcast %4 : vector<1x1024xf32> to vector<16x1024xf32>
    %6 = arith.addf %3, %5 : vector<16x1024xf32>
    %cst_5 = arith.constant 0.000000e+00 : f32
    %7 = vector.broadcast %cst_5 : f32 to vector<16x1024xf32>
    %8 = arith.cmpf oge, %6, %7 : vector<16x1024xf32>
    %c0_6 = arith.constant 0 : index
    %9 = memref.load %arg1[%c0_6] : memref<2xf32, #tpu.memory_space<smem>>
    %10 = vector.broadcast %9 : f32 to vector<16x1024xf32>
    %11 = arith.mulf %10, %6 : vector<16x1024xf32>
    %12 = arith.select %8, %6, %11 : vector<16x1024xi1>, vector<16x1024xf32>
    %13 = arith.truncf %12 : vector<16x1024xf32> to vector<16x1024xbf16>
    %c0_7 = arith.constant 0 : index
    %c0_8 = arith.constant 0 : index
    %14 = vector.load %arg5[%c0_7, %c0_8] : memref<1024x512xbf16, #tpu.memory_space<vmem>>, vector<1024x512xbf16>
    %cst_9 = arith.constant dense<0.000000e+00> : vector<16x512xf32>
    %15 = tpu.matmul %13, %14, %cst_9 {dimension_numbers = #tpu.dot_dimension_numbers<[1], [0], [0], [1], [0, 0, 1, 1], [], []>} : vector<16x1024xbf16>, vector<1024x512xbf16>, vector<16x512xf32> -> vector<16x512xf32>
    %c0_10 = arith.constant 0 : index
    %c0_11 = arith.constant 0 : index
    %16 = vector.load %arg6[%c0_10, %c0_11] : memref<1x512xf32, #tpu.memory_space<vmem>>, vector<1x512xf32>
    %17 = vector.broadcast %16 : vector<1x512xf32> to vector<16x512xf32>
    %18 = arith.addf %15, %17 : vector<16x512xf32>
    %cst_12 = arith.constant 0.000000e+00 : f32
    %19 = vector.broadcast %cst_12 : f32 to vector<16x512xf32>
    %20 = arith.cmpf oge, %18, %19 : vector<16x512xf32>
    %c1 = arith.constant 1 : index
    %21 = memref.load %arg1[%c1] : memref<2xf32, #tpu.memory_space<smem>>
    %22 = vector.broadcast %21 : f32 to vector<16x512xf32>
    %23 = arith.mulf %22, %18 : vector<16x512xf32>
    %24 = arith.select %20, %18, %23 : vector<16x512xi1>, vector<16x512xf32>
    %25 = arith.truncf %24 : vector<16x512xf32> to vector<16x512xbf16>
    %c0_13 = arith.constant 0 : index
    %c0_14 = arith.constant 0 : index
    %26 = vector.load %arg7[%c0_13, %c0_14] : memref<512x128xbf16, #tpu.memory_space<vmem>>, vector<512x128xbf16>
    %cst_15 = arith.constant dense<0.000000e+00> : vector<16x128xf32>
    %27 = tpu.matmul %25, %26, %cst_15 {dimension_numbers = #tpu.dot_dimension_numbers<[1], [0], [0], [1], [0, 0, 1, 1], [], []>} : vector<16x512xbf16>, vector<512x128xbf16>, vector<16x128xf32> -> vector<16x128xf32>
    %c0_16 = arith.constant 0 : index
    %c0_17 = arith.constant 0 : index
    %28 = vector.load %arg8[%c0_16, %c0_17] : memref<1x128xf32, #tpu.memory_space<vmem>>, vector<1x128xf32>
    %29 = vector.broadcast %28 : vector<1x128xf32> to vector<16x128xf32>
    %30 = arith.addf %27, %29 : vector<16x128xf32>
    %c0_18 = arith.constant 0 : index
    %c0_19 = arith.constant 0 : index
    %31 = vector.load %arg9[%c0_18, %c0_19] : memref<16x128xf32, #tpu.memory_space<vmem>>, vector<16x128xf32>
    tpu.vector_store %arg9[%c0_18, %c0_19], %30 {strides = array<i32>} : memref<16x128xf32, #tpu.memory_space<vmem>>, vector<16x128xf32>,
    return
  }
  func.func @transform_0(%arg0: i32, %arg1: memref<2xf32, #tpu.memory_space<smem>>) -> (i32, i32) {
    %c0_i32 = arith.constant 0 : i32
    %c0_i32_0 = arith.constant 0 : i32
    return %arg0, %c0_i32 : i32, i32
  }
  func.func @transform_1(%arg0: i32, %arg1: memref<2xf32, #tpu.memory_space<smem>>) -> (i32, i32) {
    %c0_i32 = arith.constant 0 : i32
    %c0_i32_0 = arith.constant 0 : i32
    %c0_i32_1 = arith.constant 0 : i32
    return %c0_i32, %c0_i32_0 : i32, i32
  }
  func.func @transform_2(%arg0: i32, %arg1: memref<2xf32, #tpu.memory_space<smem>>) -> (i32, i32) {
    %c0_i32 = arith.constant 0 : i32
    %c0_i32_0 = arith.constant 0 : i32
    %c0_i32_1 = arith.constant 0 : i32
    return %c0_i32, %c0_i32_0 : i32, i32
  }
  func.func @transform_3(%arg0: i32, %arg1: memref<2xf32, #tpu.memory_space<smem>>) -> (i32, i32) {
    %c0_i32 = arith.constant 0 : i32
    %c0_i32_0 = arith.constant 0 : i32
    %c0_i32_1 = arith.constant 0 : i32
    return %c0_i32, %c0_i32_0 : i32, i32
  }
  func.func @transform_4(%arg0: i32, %arg1: memref<2xf32, #tpu.memory_space<smem>>) -> (i32, i32) {
    %c0_i32 = arith.constant 0 : i32
    %c0_i32_0 = arith.constant 0 : i32
    %c0_i32_1 = arith.constant 0 : i32
    return %c0_i32, %c0_i32_0 : i32, i32
  }
  func.func @transform_5(%arg0: i32, %arg1: memref<2xf32, #tpu.memory_space<smem>>) -> (i32, i32) {
    %c0_i32 = arith.constant 0 : i32
    %c0_i32_0 = arith.constant 0 : i32
    %c0_i32_1 = arith.constant 0 : i32
    return %c0_i32, %c0_i32_0 : i32, i32
  }
  func.func @transform_6(%arg0: i32, %arg1: memref<2xf32, #tpu.memory_space<smem>>) -> (i32, i32) {
    %c0_i32 = arith.constant 0 : i32
    %c0_i32_0 = arith.constant 0 : i32
    %c0_i32_1 = arith.constant 0 : i32
    return %c0_i32, %c0_i32_0 : i32, i32
  }
  func.func @transform_7(%arg0: i32, %arg1: memref<2xf32, #tpu.memory_space<smem>>) -> (i32, i32) {
    %c0_i32 = arith.constant 0 : i32
    %c0_i32_0 = arith.constant 0 : i32
    return %arg0, %c0_i32 : i32, i32
  }
}

</mosaic_0001>

<bundles_post_ra>
// kernel: tpu_custom_call.1
= control target key start
LH: loop header
LB: loop body
LE: loop exit
PB: predicated region body
PF: predicated region fallthrough
CT: control target
= control target key end

     0   :  { %s4474_s27 = smov [#allocation3]   ;;  %s4682_s0 = inlined_call_operand.hbm [shape: f32[2], index: 0, kind: input, shape index: {}]   ;;  %s4683_s1 = inlined_call_operand.hbm [shape: f32[16,256], index: 1, kind: input, shape index: {}]   ;;  %s4684_s2 = inlined_call_operand.hbm [shape: bf16[256,1024], index: 2, kind: input, shape index: {}]   ;;  %s4685_s3 = inlined_call_operand.hbm [shape: f32[1,1024], index: 3, kind: input, shape index: {}]   ;;  %s4686_s4 = inlined_call_operand.hbm [shape: bf16[1024,512], index: 4, kind: input, shape index: {}]   ;;  %s4687_s5 = inlined_call_operand.vmem [shape: f32[1,512], index: 5, kind: input, shape index: {}]   ;;  %s4688_s6 = inlined_call_operand.hbm [shape: bf16[512,128], index: 6, kind: input, shape index: {}]   ;;  %s4689_s7 = inlined_call_operand.vmem [shape: f32[1,128], index: 7, kind: input, shape index: {}]   ;;  %s4690_s8 = inlined_call_operand.hbm [shape: f32[16,128], index: 8, kind: output, shape index: {}]  }
   0x1   :  { %14 = dma.hbm_to_smem %s4682_s0, 16, %s4474_s27, [#allocation2] }
   0x2   :  { %4464 = dma.done.wait [#allocation2], 16 }
   0x3   :  { %4465 = vsyncadd [#allocation2], 4294967280 }
   0x4   :  { %16 = sfence }
   0x5   :  { %17 = vsyncpa [#allocation5], 0 }
   0x6   :  { %18 = vsyncpa [#allocation8], 0 }
   0x7   :  { %19 = vsyncpa [#allocation11], 0 }
   0x8   :  { %20 = vsyncpa [#allocation6], 0  ;;  %s4475_s30 = smov [#allocation7]  }
   0x9   :  { %s38_s9 = sshll.u32 %s4475_s30, 4  ;;  %s39_s9 = int_to_ptr.vmem [resolvable:$true] %s38_s9 }
   0xa   :  { %s4352_s10 = scalar_lea.vmem %s39_s9, 16384  ;;  %p4357_p1 = scmp.lt.s32.totalorder %s39_s9, %s39_s9 }
   0xb   :  { %p4353_p0 = scmp.ne.s32.totalorder %s39_s9, %s4352_s10  ;;  %p4358_p2 = scmp.lt.s32.totalorder %s4352_s10, %s4352_s10 }
   0xd   :  { %p4359_p3 = por %p4358_p2, %p4357_p1 }
   0xf   :  { %p4360_p4 = pnand %p4359_p3, %p4353_p0 }
  0x11   :  { %4363 = shalt.err (!%p4360_p4)
}
  0x12   :  { %s4476_s11 = smov 512   ;;  %s4477_s12 = smov 32  }
  0x13   :  { %44 = dma.hbm_to_vmem [thread:$0]  %s4684_s2, 16384, %s39_s9, [#allocation8], %s4476_s11, %s4476_s11, %s4477_s12  }
  0x14   :  { %s4478_s14 = smov [#allocation10]   ;;  %s4479_s16 = smov [#allocation4]  }
  0x15   :  { %s60_s15 = sshll.u32 %s4478_s14, 4  ;;  %s26_s17 = sshll.u32 %s4479_s16, 4  ;;  %s61_s15 = int_to_ptr.vmem [resolvable:$true] %s60_s15  ;;  %s27_s17 = int_to_ptr.vmem [resolvable:$true] %s26_s17 }
  0x16   :  { %s4372_s18 = scalar_lea.vmem %s61_s15, 32768  ;;  %p4377_p6 = scmp.lt.s32.totalorder %s61_s15, %s61_s15 }
  0x17   :  { %p4373_p5 = scmp.ne.s32.totalorder %s61_s15, %s4372_s18  ;;  %p4378_p7 = scmp.lt.s32.totalorder %s4372_s18, %s4372_s18 }
  0x19   :  { %p4379_p8 = por %p4378_p7, %p4377_p6 }
  0x1b   :  { %p4380_p9 = pnand %p4379_p8, %p4373_p5 }
  0x1d   :  { %4383 = shalt.err (!%p4380_p9)
}
  0x1e   :  { %s4480_s19 = smov 256   ;;  %s4481_s20 = smov 16  }
  0x1f   :  { %66 = dma.hbm_to_vmem [thread:$0]  %s4686_s4, 32768, %s61_s15, [#allocation11], %s4480_s19, %s4480_s19, %s4481_s20  }
  0x20   :  { %s4392_s2 = scalar_lea.vmem %s27_s17, 512  ;;  %p4397_p11 = scmp.lt.s32.totalorder %s27_s17, %s27_s17 }
  0x21   :  { %p4393_p10 = scmp.ne.s32.totalorder %s27_s17, %s4392_s2  ;;  %p4398_p12 = scmp.lt.s32.totalorder %s4392_s2, %s4392_s2 }
  0x23   :  { %p4399_p13 = por %p4398_p12, %p4397_p11 }
  0x25   :  { %p4400_p0 = pnand %p4399_p13, %p4393_p10 }
  0x27   :  { %4403 = shalt.err (!%p4400_p0)
}
  0x28   :  { %32 = dma.hbm_to_vmem [thread:$0]  %s4683_s1, 512, %s27_s17, [#allocation5], %s4480_s19, %s4480_s19, %s4481_s20  }
  0x29   :  { %s4482_s25 = smov [#allocation9]   ;;  %s4483_s27 = smov [#allocation12]  }
  0x2a   :  { %s51_s26 = sshll.u32 %s4482_s25, 4  ;;  %s74_s28 = sshll.u32 %s4483_s27, 4  ;;  %s52_s26 = int_to_ptr.vmem [resolvable:$true] %s51_s26  ;;  %s75_s28 = int_to_ptr.vmem [resolvable:$true] %s74_s28 }
  0x2b   :  { %s4412_s29 = scalar_lea.vmem %s52_s26, 128  ;;  %p4417_p2 = scmp.lt.s32.totalorder %s52_s26, %s52_s26 }
  0x2c   :  { %p4413_p1 = scmp.ne.s32.totalorder %s52_s26, %s4412_s29  ;;  %p4418_p3 = scmp.lt.s32.totalorder %s4412_s29, %s4412_s29 }
  0x2e   :  { %p4419_p4 = por %p4418_p3, %p4417_p2 }
  0x30   :  { %p4420_p5 = pnand %p4419_p4, %p4413_p1 }
  0x32   :  { %4423 = shalt.err (!%p4420_p5)
}
  0x33   :  { %54 = dma.hbm_to_vmem [thread:$0]  %s4685_s3, 128, %s52_s26, [#allocation8]  }
  0x34   :  { %s4432_s9 = scalar_lea.vmem %s75_s28, 4096  ;;  %p4437_p7 = scmp.lt.s32.totalorder %s75_s28, %s75_s28 }
  0x35   :  { %p4433_p6 = scmp.ne.s32.totalorder %s75_s28, %s4432_s9  ;;  %p4438_p8 = scmp.lt.s32.totalorder %s4432_s9, %s4432_s9 }
  0x37   :  { %p4439_p9 = por %p4438_p8, %p4437_p7 }
  0x39   :  { %p4440_p10 = pnand %p4439_p9, %p4433_p6 }
  0x3b   :  { %4443 = shalt.err (!%p4440_p10)
}
  0x3c   :  { %s4484_s1 = smov 64   ;;  %s4485_s10 = smov 4  }
  0x3d   :  { %80 = dma.hbm_to_vmem [thread:$0]  %s4688_s6, 4096, %s75_s28, [#allocation11], %s4484_s1, %s4484_s1, %s4485_s10  }
  0x3e   :  { %4466 = dma.done.wait [#allocation5], 512  }
  0x3f   :  { %4467 = vsyncadd [#allocation5], 4294966784 }
  0x40   :  { %4468 = dma.done.wait [#allocation8], 16512  }
  0x41   :  { %4469 = vsyncadd [#allocation8], 4294950784 }
  0x42   :  { %4470 = dma.done.wait [#allocation11], 36864  }
  0x43   :  { %4471 = vsyncadd [#allocation11], 4294930432  ;;  %v161_v0 = vld [vmem:[#allocation7 + $0x1c0] sm:$0xff]  ;;  %v162_v2 = vld [vmem:[#allocation7 + $0x1c8] sm:$0xff]  ;;  %s1103_s3 = sld [smem:[#allocation3]]  ;;  %s4486_s15 = smov [#allocation13]  }
  0x44   :  { %v165_v1 = vld [vmem:[#allocation7 + $0x1e0] sm:$0xff]  ;;  %v166_v4 = vld [vmem:[#allocation7 + $0x1e8] sm:$0xff]  ;;  %v102_v54 = vld [vmem:[#allocation4 + $0x18] sm:$0xff]  ;;  %s3429_s16 = sshll.u32 %s4486_s15, 4  ;;  %s3430_s16 = int_to_ptr.vmem [resolvable:$true] %s3429_s16 }
  0x45   :  { %v3500_v3 = vcombine.high %v161_v0, %v165_v1  ;;  %v3499_v5 = vcombine.low %v161_v0, %v165_v1  ;;  %v153_v6 = vld [vmem:[#allocation7 + $0x180] sm:$0xff]  ;;  %v3502_v8 = vcombine.high %v162_v2, %v166_v4  ;;  %v3501_v9 = vcombine.low %v162_v2, %v166_v4  ;;  %v154_v11 = vld [vmem:[#allocation7 + $0x188] sm:$0xff]  ;;  %s4444_s17 = scalar_lea.vmem %s3430_s16, 256  ;;  %p4449_p12 = scmp.lt.s32.totalorder %s3430_s16, %s3430_s16 }
  0x46   :  { %v157_v7 = vld [vmem:[#allocation7 + $0x1a0] sm:$0xff]  ;;  %v158_v12 = vld [vmem:[#allocation7 + $0x1a8] sm:$0xff]  ;;  %p4445_p11 = scmp.ne.s32.totalorder %s3430_s16, %s4444_s17  ;;  %p4450_p13 = scmp.lt.s32.totalorder %s4444_s17, %s4444_s17 }
  0x47   :  { %v3492_v10 = vcombine.high %v153_v6, %v157_v7  ;;  %v145_v13 = vld [vmem:[#allocation7 + $0x140] sm:$0xff]  ;;  %915 = vmatprep.subr.bf16.mxu0 %v3500_v3  ;;  %v3494_v14 = vcombine.high %v154_v11, %v158_v12  ;;  %v146_v16 = vld [vmem:[#allocation7 + $0x148] sm:$0xff]  ;;  %958 = vmatprep.subr.bf16.mxu1 %v3502_v8  ;;  %v3491_v18 = vcombine.low %v153_v6, %v157_v7 }
  0x48   :  { %v149_v15 = vld [vmem:[#allocation7 + $0x160] sm:$0xff]  ;;  %v150_v17 = vld [vmem:[#allocation7 + $0x168] sm:$0xff]  ;;  %916 = vmatpush1.bf16.msra.mxu0 %v3499_v5  ;;  %959 = vmatpush1.bf16.msra.mxu1 %v3501_v9  ;;  %v3493_v19 = vcombine.low %v154_v11, %v158_v12  ;;  %p4451_p0 = por %p4450_p13, %p4449_p12 }
  0x49   :  { %917 = vmatprep.subr.bf16.mxu0 %v3492_v10  ;;  %v3484_v20 = vcombine.high %v145_v13, %v149_v15  ;;  %960 = vmatprep.subr.bf16.mxu1 %v3494_v14  ;;  %v3486_v21 = vcombine.high %v146_v16, %v150_v17  ;;  %v137_v22 = vld [vmem:[#allocation7 + $0x100] sm:$0xff]  ;;  %v138_v24 = vld [vmem:[#allocation7 + $0x108] sm:$0xff]  ;;  %v3483_v26 = vcombine.low %v145_v13, %v149_v15 }
  0x4a   :  { %v141_v23 = vld [vmem:[#allocation7 + $0x120] sm:$0xff]  ;;  %v142_v25 = vld [vmem:[#allocation7 + $0x128] sm:$0xff]  ;;  %v3485_v27 = vcombine.low %v146_v16, %v150_v17  ;;  %p4452_p1 = pnand %p4451_p0, %p4445_p11 }
  0x4b   :  { %v3476_v28 = vcombine.high %v137_v22, %v141_v23  ;;  %v3478_v29 = vcombine.high %v138_v24, %v142_v25  ;;  %v129_v30 = vld [vmem:[#allocation7 + $0xc0] sm:$0xff]  ;;  %v130_v32 = vld [vmem:[#allocation7 + $0xc8] sm:$0xff]  ;;  %v3475_v34 = vcombine.low %v137_v22, %v141_v23  ;;  %v3477_v35 = vcombine.low %v138_v24, %v142_v25 }
  0x4c   :  { %918 = vmatpush1.bf16.msra.mxu0 %v3491_v18  ;;  %961 = vmatpush1.bf16.msra.mxu1 %v3493_v19  ;;  %v133_v31 = vld [vmem:[#allocation7 + $0xe0] sm:$0xff]  ;;  %v134_v33 = vld [vmem:[#allocation7 + $0xe8] sm:$0xff] }
  0x4d   :  { %919 = vmatprep.subr.bf16.mxu0 %v3484_v20  ;;  %962 = vmatprep.subr.bf16.mxu1 %v3486_v21  ;;  %v3468_v36 = vcombine.high %v129_v30, %v133_v31  ;;  %v3470_v37 = vcombine.high %v130_v32, %v134_v33  ;;  %v121_v38 = vld [vmem:[#allocation7 + $0x80] sm:$0xff]  ;;  %v122_v40 = vld [vmem:[#allocation7 + $0x88] sm:$0xff]  ;;  %v3467_v42 = vcombine.low %v129_v30, %v133_v31 }
  0x4e   :  { %v125_v39 = vld [vmem:[#allocation7 + $0xa0] sm:$0xff]  ;;  %v126_v41 = vld [vmem:[#allocation7 + $0xa8] sm:$0xff]  ;;  %v3469_v43 = vcombine.low %v130_v32, %v134_v33 }
  0x4f   :  { %v3460_v44 = vcombine.high %v121_v38, %v125_v39  ;;  %v3462_v45 = vcombine.high %v122_v40, %v126_v41  ;;  %v113_v46 = vld [vmem:[#allocation7 + $0x40] sm:$0xff]  ;;  %v114_v48 = vld [vmem:[#allocation7 + $0x48] sm:$0xff]  ;;  %v3459_v50 = vcombine.low %v121_v38, %v125_v39  ;;  %v3461_v51 = vcombine.low %v122_v40, %v126_v41 }
  0x50   :  { %920 = vmatpush1.bf16.msra.mxu0 %v3483_v26  ;;  %963 = vmatpush1.bf16.msra.mxu1 %v3485_v27  ;;  %v117_v47 = vld [vmem:[#allocation7 + $0x60] sm:$0xff]  ;;  %v118_v49 = vld [vmem:[#allocation7 + $0x68] sm:$0xff] }
  0x51   :  { %921 = vmatprep.subr.bf16.mxu0 %v3476_v28  ;;  %964 = vmatprep.subr.bf16.mxu1 %v3478_v29  ;;  %v3452_v52 = vcombine.high %v113_v46, %v117_v47  ;;  %v100_v53 = vld [vmem:[#allocation4 + $0x8] sm:$0xff]  ;;  %v3454_v55 = vcombine.high %v114_v48, %v118_v49  ;;  %v105_v56 = vld [vmem:[#allocation7] sm:$0xff]  ;;  %v3451_v61 = vcombine.low %v113_v46, %v117_v47 }
  0x52   :  { %v109_v57 = vld [vmem:[#allocation7 + $0x20] sm:$0xff]  ;;  %v4552_v58 = vpack.c.bf16 %v102_v54, %v100_v53  ;;  %v106_v59 = vld [vmem:[#allocation7 + $0x8] sm:$0xff]  ;;  %v3453_v62 = vcombine.low %v114_v48, %v118_v49 }
  0x53   :  { %v110_v60 = vld [vmem:[#allocation7 + $0x28] sm:$0xff]  ;;  %v3444_v63 = vcombine.high %v105_v56, %v109_v57  ;;  %v225_v1 = vld [vmem:[#allocation7 + $0x3c0] sm:$0xff]  ;;  %v3443_v5 = vcombine.low %v105_v56, %v109_v57 }
  0x54   :  { %922 = vmatpush1.bf16.msra.mxu0 %v3475_v34  ;;  %965 = vmatpush1.bf16.msra.mxu1 %v3477_v35  ;;  %v3446_v0 = vcombine.high %v106_v59, %v110_v60  ;;  %v229_v2 = vld [vmem:[#allocation7 + $0x3e0] sm:$0xff]  ;;  %v226_v3 = vld [vmem:[#allocation7 + $0x3c8] sm:$0xff]  ;;  %v3445_v6 = vcombine.low %v106_v59, %v110_v60 }
  0x55   :  { %923 = vmatprep.subr.bf16.mxu0 %v3468_v36  ;;  %966 = vmatprep.subr.bf16.mxu1 %v3470_v37  ;;  %v230_v4 = vld [vmem:[#allocation7 + $0x3e8] sm:$0xff]  ;;  %v3564_v7 = vcombine.high %v225_v1, %v229_v2  ;;  %v217_v9 = vld [vmem:[#allocation7 + $0x380] sm:$0xff]  ;;  %v3563_v13 = vcombine.low %v225_v1, %v229_v2 }
  0x56   :  { %947 = vmatprep.mubr.bf16.mxu0 %v4552_v58  ;;  %990 = vmatprep.mubr.bf16.mxu1 %v4552_v58  ;;  %v3566_v8 = vcombine.high %v226_v3, %v230_v4  ;;  %v221_v10 = vld [vmem:[#allocation7 + $0x3a0] sm:$0xff]  ;;  %v218_v11 = vld [vmem:[#allocation7 + $0x388] sm:$0xff]  ;;  %v3565_v14 = vcombine.low %v226_v3, %v230_v4  ;;  %v163_v3 = vld [vmem:[#allocation7 + $0x1d0] sm:$0xff] }
  0x57   :  { %v222_v12 = vld [vmem:[#allocation7 + $0x3a8] sm:$0xff]  ;;  %v3556_v15 = vcombine.high %v217_v9, %v221_v10  ;;  %v209_v17 = vld [vmem:[#allocation7 + $0x340] sm:$0xff]  ;;  %v3555_v21 = vcombine.low %v217_v9, %v221_v10  ;;  %v167_v4 = vld [vmem:[#allocation7 + $0x1f0] sm:$0xff] }
  0x58   :  { %924 = vmatpush1.bf16.msra.mxu0 %v3467_v42  ;;  %967 = vmatpush1.bf16.msra.mxu1 %v3469_v43  ;;  %v3558_v16 = vcombine.high %v218_v11, %v222_v12  ;;  %v213_v18 = vld [vmem:[#allocation7 + $0x360] sm:$0xff]  ;;  %v210_v19 = vld [vmem:[#allocation7 + $0x348] sm:$0xff]  ;;  %v3557_v22 = vcombine.low %v218_v11, %v222_v12  ;;  %v3504_v10 = vcombine.high %v163_v3, %v167_v4  ;;  %v155_v12 = vld [vmem:[#allocation7 + $0x190] sm:$0xff] }
  0x59   :  { %925 = vmatprep.subr.bf16.mxu0 %v3460_v44  ;;  %968 = vmatprep.subr.bf16.mxu1 %v3462_v45  ;;  %v214_v20 = vld [vmem:[#allocation7 + $0x368] sm:$0xff]  ;;  %v3548_v23 = vcombine.high %v209_v17, %v213_v18  ;;  %v201_v25 = vld [vmem:[#allocation7 + $0x300] sm:$0xff]  ;;  %v3547_v29 = vcombine.low %v209_v17, %v213_v18  ;;  %v3503_v17 = vcombine.low %v163_v3, %v167_v4  ;;  %v231_v3 = vld [vmem:[#allocation7 + $0x3f0] sm:$0xff] }
  0x5a   :  { %v3550_v24 = vcombine.high %v210_v19, %v214_v20  ;;  %v205_v26 = vld [vmem:[#allocation7 + $0x320] sm:$0xff]  ;;  %v202_v27 = vld [vmem:[#allocation7 + $0x308] sm:$0xff]  ;;  %v3549_v30 = vcombine.low %v210_v19, %v214_v20 }
  0x5b   :  { %v206_v28 = vld [vmem:[#allocation7 + $0x328] sm:$0xff]  ;;  %v3540_v31 = vcombine.high %v201_v25, %v205_v26  ;;  %v193_v33 = vld [vmem:[#allocation7 + $0x2c0] sm:$0xff]  ;;  %v3539_v37 = vcombine.low %v201_v25, %v205_v26 }
  0x5c   :  { %926 = vmatpush1.bf16.msra.mxu0 %v3459_v50  ;;  %969 = vmatpush1.bf16.msra.mxu1 %v3461_v51  ;;  %v3542_v32 = vcombine.high %v202_v27, %v206_v28  ;;  %v197_v34 = vld [vmem:[#allocation7 + $0x2e0] sm:$0xff]  ;;  %v194_v35 = vld [vmem:[#allocation7 + $0x2c8] sm:$0xff]  ;;  %v3541_v38 = vcombine.low %v202_v27, %v206_v28 }
  0x5d   :  { %927 = vmatprep.subr.bf16.mxu0 %v3452_v52  ;;  %970 = vmatprep.subr.bf16.mxu1 %v3454_v55  ;;  %v198_v36 = vld [vmem:[#allocation7 + $0x2e8] sm:$0xff]  ;;  %v3532_v39 = vcombine.high %v193_v33, %v197_v34  ;;  %v185_v41 = vld [vmem:[#allocation7 + $0x280] sm:$0xff]  ;;  %v3531_v45 = vcombine.low %v193_v33, %v197_v34 }
  0x5e   :  { %v3534_v40 = vcombine.high %v194_v35, %v198_v36  ;;  %v189_v42 = vld [vmem:[#allocation7 + $0x2a0] sm:$0xff]  ;;  %v186_v43 = vld [vmem:[#allocation7 + $0x288] sm:$0xff]  ;;  %v3533_v46 = vcombine.low %v194_v35, %v198_v36 }
  0x5f   :  { %v190_v44 = vld [vmem:[#allocation7 + $0x2a8] sm:$0xff]  ;;  %v3524_v47 = vcombine.high %v185_v41, %v189_v42  ;;  %v177_v49 = vld [vmem:[#allocation7 + $0x240] sm:$0xff]  ;;  %v3523_v53 = vcombine.low %v185_v41, %v189_v42 }
  0x60   :  { %928 = vmatpush1.bf16.msra.mxu0 %v3451_v61  ;;  %971 = vmatpush1.bf16.msra.mxu1 %v3453_v62  ;;  %v3526_v48 = vcombine.high %v186_v43, %v190_v44  ;;  %v181_v50 = vld [vmem:[#allocation7 + $0x260] sm:$0xff]  ;;  %v178_v51 = vld [vmem:[#allocation7 + $0x248] sm:$0xff]  ;;  %v3525_v54 = vcombine.low %v186_v43, %v190_v44  ;;  %v123_v44 = vld [vmem:[#allocation7 + $0x90] sm:$0xff] }
  0x61   :  { %929 = vmatprep.subr.bf16.mxu0 %v3444_v63  ;;  %972 = vmatprep.subr.bf16.mxu1 %v3446_v0  ;;  %v182_v52 = vld [vmem:[#allocation7 + $0x268] sm:$0xff]  ;;  %v3516_v55 = vcombine.high %v177_v49, %v181_v50  ;;  %v169_v57 = vld [vmem:[#allocation7 + $0x200] sm:$0xff]  ;;  %v3515_v62 = vcombine.low %v177_v49, %v181_v50  ;;  %v115_v49 = vld [vmem:[#allocation7 + $0x50] sm:$0xff] }
  0x62   :  { %v3518_v56 = vcombine.high %v178_v51, %v182_v52  ;;  %v173_v59 = vld [vmem:[#allocation7 + $0x220] sm:$0xff]  ;;  %v170_v60 = vld [vmem:[#allocation7 + $0x208] sm:$0xff]  ;;  %v3517_v63 = vcombine.low %v178_v51, %v182_v52  ;;  %v119_v50 = vld [vmem:[#allocation7 + $0x70] sm:$0xff] }
  0x63   :  { %v174_v61 = vld [vmem:[#allocation7 + $0x228] sm:$0xff]  ;;  %v3508_v0 = vcombine.high %v169_v57, %v173_v59  ;;  %v99_v2 = vld [vmem:[#allocation4] sm:$0xff] }
  0x64   :  { %930 = vmatpush1.bf16.msra.mxu0 %v3443_v5  ;;  %973 = vmatpush1.bf16.msra.mxu1 %v3445_v6  ;;  %v3510_v1 = vcombine.high %v170_v60, %v174_v61  ;;  %v164_v5 = vld [vmem:[#allocation7 + $0x1d8] sm:$0xff]  ;;  %v3509_v9 = vcombine.low %v170_v60, %v174_v61  ;;  %v3456_v61 = vcombine.high %v115_v49, %v119_v50 }
  0x65   :  { %931 = vmatprep.subr.bf16.mxu0 %v3564_v7  ;;  %974 = vmatprep.subr.bf16.mxu1 %v3566_v8  ;;  %v168_v6 = vld [vmem:[#allocation7 + $0x1f8] sm:$0xff]  ;;  %v3507_v7 = vcombine.low %v169_v57, %v173_v59  ;;  %v101_v8 = vld [vmem:[#allocation4 + $0x10] sm:$0xff] }
  0x66   :  { %v3506_v11 = vcombine.high %v164_v5, %v168_v6  ;;  %v3505_v18 = vcombine.low %v164_v5, %v168_v6  ;;  %v107_v57 = vld [vmem:[#allocation7 + $0x10] sm:$0xff]  ;;  %v228_v6 = vld [vmem:[#allocation7 + $0x3d8] sm:$0xff] }
  0x67   :  { %v111_v59 = vld [vmem:[#allocation7 + $0x30] sm:$0xff] }
  0x68   :  { %932 = vmatpush2.bf16.msra.mxu0 %v3563_v13  ;;  %975 = vmatpush2.bf16.msra.mxu1 %v3565_v14  ;;  %v159_v13 = vld [vmem:[#allocation7 + $0x1b0] sm:$0xff]  ;;  %v4556_v14 = vpack.c.bf16 %v101_v8, %v99_v2  ;;  %v3448_v5 = vcombine.high %v107_v57, %v111_v59 }
  0x69   :  { %933 = vmatprep.subr.bf16.mxu0 %v3556_v15  ;;  %976 = vmatprep.subr.bf16.mxu1 %v3558_v16  ;;  %v156_v15 = vld [vmem:[#allocation7 + $0x198] sm:$0xff]  ;;  %v3496_v19 = vcombine.high %v155_v12, %v159_v13  ;;  %v3495_v25 = vcombine.low %v155_v12, %v159_v13  ;;  %v227_v2 = vld [vmem:[#allocation7 + $0x3d0] sm:$0xff] }
  0x6a   :  { %v160_v16 = vld [vmem:[#allocation7 + $0x1b8] sm:$0xff]  ;;  %v3568_v13 = vcombine.high %v227_v2, %v231_v3 }
  0x6b   :  { %v3498_v20 = vcombine.high %v156_v15, %v160_v16  ;;  %v3497_v26 = vcombine.low %v156_v15, %v160_v16  ;;  %v220_v15 = vld [vmem:[#allocation7 + $0x398] sm:$0xff] }
  0x6c   :  { %934 = vmatpush2.bf16.msra.mxu0 %v3555_v21  ;;  %977 = vmatpush2.bf16.msra.mxu1 %v3557_v22  ;;  %v147_v21 = vld [vmem:[#allocation7 + $0x150] sm:$0xff]  ;;  %v224_v16 = vld [vmem:[#allocation7 + $0x3b8] sm:$0xff] }
  0x6d   :  { %935 = vmatprep.subr.bf16.mxu0 %v3548_v23  ;;  %978 = vmatprep.subr.bf16.mxu1 %v3550_v24  ;;  %v151_v22 = vld [vmem:[#allocation7 + $0x170] sm:$0xff]  ;;  %v148_v23 = vld [vmem:[#allocation7 + $0x158] sm:$0xff] }
  0x6e   :  { %v152_v24 = vld [vmem:[#allocation7 + $0x178] sm:$0xff]  ;;  %v3488_v27 = vcombine.high %v147_v21, %v151_v22  ;;  %v3487_v33 = vcombine.low %v147_v21, %v151_v22 }
  0x6f   :  { %v3490_v28 = vcombine.high %v148_v23, %v152_v24  ;;  %v3489_v34 = vcombine.low %v148_v23, %v152_v24  ;;  %v212_v23 = vld [vmem:[#allocation7 + $0x358] sm:$0xff] }
  0x70   :  { %936 = vmatpush2.bf16.msra.mxu0 %v3547_v29  ;;  %979 = vmatpush2.bf16.msra.mxu1 %v3549_v30  ;;  %v139_v29 = vld [vmem:[#allocation7 + $0x110] sm:$0xff]  ;;  %v216_v24 = vld [vmem:[#allocation7 + $0x378] sm:$0xff] }
  0x71   :  { %937 = vmatprep.subr.bf16.mxu0 %v3540_v31  ;;  %980 = vmatprep.subr.bf16.mxu1 %v3542_v32  ;;  %v143_v30 = vld [vmem:[#allocation7 + $0x130] sm:$0xff]  ;;  %v140_v31 = vld [vmem:[#allocation7 + $0x118] sm:$0xff] }
  0x72   :  { %v144_v32 = vld [vmem:[#allocation7 + $0x138] sm:$0xff]  ;;  %v3480_v35 = vcombine.high %v139_v29, %v143_v30  ;;  %v3479_v41 = vcombine.low %v139_v29, %v143_v30  ;;  %v3561_v29 = vcombine.low %v220_v15, %v224_v16 }
  0x73   :  { %v3482_v36 = vcombine.high %v140_v31, %v144_v32  ;;  %v3481_v42 = vcombine.low %v140_v31, %v144_v32  ;;  %v204_v31 = vld [vmem:[#allocation7 + $0x318] sm:$0xff] }
  0x74   :  { %938 = vmatpush2.bf16.msra.mxu0 %v3539_v37  ;;  %981 = vmatpush2.bf16.msra.mxu1 %v3541_v38  ;;  %v131_v37 = vld [vmem:[#allocation7 + $0xd0] sm:$0xff]  ;;  %v208_v32 = vld [vmem:[#allocation7 + $0x338] sm:$0xff] }
  0x75   :  { %939 = vmatprep.subr.bf16.mxu0 %v3532_v39  ;;  %982 = vmatprep.subr.bf16.mxu1 %v3534_v40  ;;  %v135_v38 = vld [vmem:[#allocation7 + $0xf0] sm:$0xff]  ;;  %v132_v39 = vld [vmem:[#allocation7 + $0xd8] sm:$0xff] }
  0x76   :  { %v136_v40 = vld [vmem:[#allocation7 + $0xf8] sm:$0xff]  ;;  %v3472_v43 = vcombine.high %v131_v37, %v135_v38 }
  0x77   :  { %v3473_v51 = vcombine.low %v132_v39, %v136_v40 }
  0x78   :  { %940 = vmatpush2.bf16.msra.mxu0 %v3531_v45  ;;  %983 = vmatpush2.bf16.msra.mxu1 %v3533_v46  ;;  %v127_v45 = vld [vmem:[#allocation7 + $0xb0] sm:$0xff]  ;;  %v124_v46 = vld [vmem:[#allocation7 + $0x98] sm:$0xff] }
  0x79   :  { %941 = vmatprep.subr.bf16.mxu0 %v3524_v47  ;;  %984 = vmatprep.subr.bf16.mxu1 %v3526_v48  ;;  %v128_v47 = vld [vmem:[#allocation7 + $0xb8] sm:$0xff]  ;;  %v3471_v48 = vcombine.low %v131_v37, %v135_v38  ;;  %v3464_v52 = vcombine.high %v123_v44, %v127_v45  ;;  %v3553_v37 = vcombine.low %v212_v23, %v216_v24 }
  0x7a   :  { %v3465_v60 = vcombine.low %v124_v46, %v128_v47 }
  0x7c   :  { %942 = vmatpush2.bf16.msra.mxu0 %v3523_v53  ;;  %985 = vmatpush2.bf16.msra.mxu1 %v3525_v54  ;;  %v116_v53 = vld [vmem:[#allocation7 + $0x58] sm:$0xff] }
  0x7d   :  { %943 = vmatprep.subr.bf16.mxu0 %v3516_v55  ;;  %986 = vmatprep.subr.bf16.mxu1 %v3518_v56  ;;  %v120_v54 = vld [vmem:[#allocation7 + $0x78] sm:$0xff]  ;;  %v3466_v55 = vcombine.high %v124_v46, %v128_v47  ;;  %v3463_v56 = vcombine.low %v123_v44, %v127_v45  ;;  %v191_v44 = vld [vmem:[#allocation7 + $0x2b0] sm:$0xff] }
  0x7e   :  { %v3457_v4 = vcombine.low %v116_v53, %v120_v54  ;;  %v188_v46 = vld [vmem:[#allocation7 + $0x298] sm:$0xff] }
  0x7f   :  { %v192_v47 = vld [vmem:[#allocation7 + $0x2b8] sm:$0xff] }
  0x80   :  { %944 = vmatpush2.bf16.msra.mxu0 %v3515_v62  ;;  %987 = vmatpush2.bf16.msra.mxu1 %v3517_v63  ;;  %v108_v62 = vld [vmem:[#allocation7 + $0x18] sm:$0xff] }
  0x81   :  { %945 = vmatprep.subr.bf16.mxu0 %v3508_v0  ;;  %988 = vmatprep.subr.bf16.mxu1 %v3510_v1  ;;  %v112_v63 = vld [vmem:[#allocation7 + $0x38] sm:$0xff]  ;;  %v3458_v0 = vcombine.high %v116_v53, %v120_v54  ;;  %v3455_v1 = vcombine.low %v115_v49, %v119_v50  ;;  %v179_v50 = vld [vmem:[#allocation7 + $0x250] sm:$0xff] }
  0x82   :  { %v3450_v8 = vcombine.high %v108_v62, %v112_v63  ;;  %v3449_v12 = vcombine.low %v108_v62, %v112_v63  ;;  %v180_v54 = vld [vmem:[#allocation7 + $0x258] sm:$0xff] }
  0x83   :  { %v172_v63 = vld [vmem:[#allocation7 + $0x218] sm:$0xff] }
  0x84   :  { %946 = vmatpush2.bf16.msra.mxu0 %v3507_v7  ;;  %989 = vmatpush2.bf16.msra.mxu1 %v3509_v9  ;;  %v232_v7 = vld [vmem:[#allocation7 + $0x3f8] sm:$0xff]  ;;  %v3447_v9 = vcombine.low %v107_v57, %v111_v59  ;;  %v171_v59 = vld [vmem:[#allocation7 + $0x210] sm:$0xff] }
  0x85   :  { %1001 = vmatprep.subr.bf16.mxu0 %v3504_v10  ;;  %1044 = vmatprep.subr.bf16.mxu1 %v3506_v11  ;;  %v219_v10 = vld [vmem:[#allocation7 + $0x390] sm:$0xff]  ;;  %v3569_v21 = vcombine.low %v228_v6, %v232_v7 }
  0x86   :  { %v223_v11 = vld [vmem:[#allocation7 + $0x3b0] sm:$0xff] }
  0x87   :  { %948 = vmatmul.mubr.bf16.vlgmr.msra.gmra.mxu0 %v4556_v14  ;;  %991 = vmatmul.mubr.bf16.vlgmr.msra.gmra.mxu1 %v4556_v14  ;;  %v3560_v22 = vcombine.high %v219_v10, %v223_v11 }
  0x88   :  { %1002 = vmatpush1.bf16.msra.mxu0 %v3503_v17  ;;  %1045 = vmatpush1.bf16.msra.mxu1 %v3505_v18  ;;  %v3570_v17 = vcombine.high %v228_v6, %v232_v7  ;;  %v3567_v18 = vcombine.low %v227_v2, %v231_v3  ;;  %v3922_v6 = vld [vmem:[#allocation10 + $0xe4] ss:$16 sps:$4 sm:$0xff]  }
  0x89   :  { %1003 = vmatprep.subr.bf16.mxu0 %v3496_v19  ;;  %1046 = vmatprep.subr.bf16.mxu1 %v3498_v20  ;;  %v211_v19 = vld [vmem:[#allocation7 + $0x350] sm:$0xff] }
  0x8a   :  { %1033 = vmatprep.mubr.bf16.mxu0 %v4552_v58  ;;  %1076 = vmatprep.mubr.bf16.mxu1 %v4552_v58  ;;  %v3474_v58 = vcombine.high %v132_v39, %v136_v40  ;;  %v215_v20 = vld [vmem:[#allocation7 + $0x370] sm:$0xff]  ;;  %v196_v39 = vld [vmem:[#allocation7 + $0x2d8] sm:$0xff] }
  0x8b   :  { %v3552_v30 = vcombine.high %v211_v19, %v215_v20  ;;  %v200_v40 = vld [vmem:[#allocation7 + $0x2f8] sm:$0xff] }
  0x8c   :  { %1004 = vmatpush1.bf16.msra.mxu0 %v3495_v25  ;;  %1047 = vmatpush1.bf16.msra.mxu1 %v3497_v26  ;;  %v3562_v25 = vcombine.high %v220_v15, %v224_v16  ;;  %v3559_v26 = vcombine.low %v219_v10, %v223_v11  ;;  %v3920_v10 = vld [vmem:[#allocation10 + $0xe0] ss:$16 sps:$4 sm:$0xff]  }
  0x8d   :  { %1005 = vmatprep.subr.bf16.mxu0 %v3488_v27  ;;  %1048 = vmatprep.subr.bf16.mxu1 %v3490_v28  ;;  %v203_v27 = vld [vmem:[#allocation7 + $0x310] sm:$0xff]  ;;  %v3923_v11 = vld [vmem:[#allocation10 + $0x2e0] ss:$16 sps:$4 sm:$0xff]  }
  0x8e   :  { %v207_v28 = vld [vmem:[#allocation7 + $0x330] sm:$0xff]  ;;  %v3926_v15 = vld [vmem:[#allocation10 + $0xc0] ss:$16 sps:$4 sm:$0xff]  }
  0x8f   :  { %v3544_v38 = vcombine.high %v203_v27, %v207_v28  ;;  %v3929_v16 = vld [vmem:[#allocation10 + $0x2c0] ss:$16 sps:$4 sm:$0xff]  }
  0x90   :  { %1006 = vmatpush1.bf16.msra.mxu0 %v3487_v33  ;;  %1049 = vmatpush1.bf16.msra.mxu1 %v3489_v34  ;;  %v3554_v33 = vcombine.high %v212_v23, %v216_v24  ;;  %v3551_v34 = vcombine.low %v211_v19, %v215_v20  ;;  %v3932_v19 = vld [vmem:[#allocation10 + $0xa0] ss:$16 sps:$4 sm:$0xff]  }
  0x91   :  { %1007 = vmatprep.subr.bf16.mxu0 %v3480_v35  ;;  %1050 = vmatprep.subr.bf16.mxu1 %v3482_v36  ;;  %v195_v35 = vld [vmem:[#allocation7 + $0x2d0] sm:$0xff]  ;;  %v3935_v20 = vld [vmem:[#allocation10 + $0x2a0] ss:$16 sps:$4 sm:$0xff]  }
  0x92   :  { %v199_v36 = vld [vmem:[#allocation7 + $0x2f0] sm:$0xff]  ;;  %v3938_v23 = vld [vmem:[#allocation10 + $0x80] ss:$16 sps:$4 sm:$0xff]  }
  0x93   :  { %v3536_v45 = vcombine.high %v195_v35, %v199_v36  ;;  %v3535_v49 = vcombine.low %v195_v35, %v199_v36  ;;  %v3941_v24 = vld [vmem:[#allocation10 + $0x280] ss:$16 sps:$4 sm:$0xff]   ;;  %v3964_v36 = vld [vmem:[#allocation10 + $0x4] ss:$16 sps:$4 sm:$0xff]  }
  0x94   :  { %1008 = vmatpush1.bf16.msra.mxu0 %v3479_v41  ;;  %1051 = vmatpush1.bf16.msra.mxu1 %v3481_v42  ;;  %v3546_v41 = vcombine.high %v204_v31, %v208_v32  ;;  %v3543_v42 = vcombine.low %v203_v27, %v207_v28  ;;  %v3947_v27 = vld [vmem:[#allocation10 + $0x260] ss:$16 sps:$4 sm:$0xff]   ;;  %v3952_v28 = vld [vmem:[#allocation10 + $0x44] ss:$16 sps:$4 sm:$0xff]  }
  0x95   :  { %1009 = vmatprep.subr.bf16.mxu0 %v3472_v43  ;;  %1052 = vmatprep.subr.bf16.mxu1 %v3474_v58  ;;  %v187_v43 = vld [vmem:[#allocation7 + $0x290] sm:$0xff]  ;;  %v3545_v58 = vcombine.low %v204_v31, %v208_v32  ;;  %v3953_v31 = vld [vmem:[#allocation10 + $0x240] ss:$16 sps:$4 sm:$0xff]   ;;  %v3958_v32 = vld [vmem:[#allocation10 + $0x24] ss:$16 sps:$4 sm:$0xff]  }
  0x96   :  { %v3528_v53 = vcombine.high %v187_v43, %v191_v44  ;;  %v3527_v57 = vcombine.low %v187_v43, %v191_v44  ;;  %v3959_v35 = vld [vmem:[#allocation10 + $0x220] ss:$16 sps:$4 sm:$0xff]   ;;  %v3976_v44 = vld [vmem:[#allocation10 + $0x1c4] ss:$16 sps:$4 sm:$0xff]  }
  0x97   :  { %v3971_v43 = vld [vmem:[#allocation10 + $0x3e0] ss:$16 sps:$4 sm:$0xff]  }
  0x98   :  { %1010 = vmatpush1.bf16.msra.mxu0 %v3471_v48  ;;  %1053 = vmatpush1.bf16.msra.mxu1 %v3473_v51  ;;  %v3538_v48 = vcombine.high %v196_v39, %v200_v40  ;;  %v183_v51 = vld [vmem:[#allocation7 + $0x270] sm:$0xff] }
  0x99   :  { %1011 = vmatprep.subr.bf16.mxu0 %v3464_v52  ;;  %1054 = vmatprep.subr.bf16.mxu1 %v3466_v55  ;;  %v3537_v52 = vcombine.low %v196_v39, %v200_v40  ;;  %v184_v55 = vld [vmem:[#allocation7 + $0x278] sm:$0xff]  ;;  %v3520_v62 = vcombine.high %v179_v50, %v183_v51  ;;  %v3519_v2 = vcombine.low %v179_v50, %v183_v51 }
  0x9a   :  { %v3521_v3 = vcombine.low %v180_v54, %v184_v55  ;;  %v3965_v39 = vld [vmem:[#allocation10 + $0x200] ss:$16 sps:$4 sm:$0xff]   ;;  %v3970_v40 = vld [vmem:[#allocation10 + $0x1e4] ss:$16 sps:$4 sm:$0xff]  }
  0x9b   :  { %v3983_v50 = vld [vmem:[#allocation10 + $0x3a0] ss:$16 sps:$4 sm:$0xff]   ;;  %v3988_v51 = vld [vmem:[#allocation10 + $0x184] ss:$16 sps:$4 sm:$0xff]  }
  0x9c   :  { %1012 = vmatpush1.bf16.msra.mxu0 %v3463_v56  ;;  %1055 = vmatpush1.bf16.msra.mxu1 %v3465_v60  ;;  %v3530_v56 = vcombine.high %v188_v46, %v192_v47  ;;  %v175_v60 = vld [vmem:[#allocation7 + $0x230] sm:$0xff] }
  0x9d   :  { %1013 = vmatprep.subr.bf16.mxu0 %v3456_v61  ;;  %1056 = vmatprep.subr.bf16.mxu1 %v3458_v0  ;;  %v3529_v61 = vcombine.low %v188_v46, %v192_v47  ;;  %v176_v0 = vld [vmem:[#allocation7 + $0x238] sm:$0xff]  ;;  %v3511_v7 = vcombine.low %v171_v59, %v175_v60 }
  0x9e   :  { %v3977_v46 = vld [vmem:[#allocation10 + $0x3c0] ss:$16 sps:$4 sm:$0xff]   ;;  %v3982_v47 = vld [vmem:[#allocation10 + $0x1a4] ss:$16 sps:$4 sm:$0xff]  }
  0xa0   :  { %1014 = vmatpush1.bf16.msra.mxu0 %v3455_v1  ;;  %1057 = vmatpush1.bf16.msra.mxu1 %v3457_v4  ;;  %v3522_v1 = vcombine.high %v180_v54, %v184_v55  ;;  %v3512_v4 = vcombine.high %v171_v59, %v175_v60  ;;  %v3989_v54 = vld [vmem:[#allocation10 + $0x380] ss:$16 sps:$4 sm:$0xff]   ;;  %v3994_v55 = vld [vmem:[#allocation10 + $0x164] ss:$16 sps:$4 sm:$0xff]  }
  0xa1   :  { %1015 = vmatprep.subr.bf16.mxu0 %v3448_v5  ;;  %1058 = vmatprep.subr.bf16.mxu1 %v3450_v8  ;;  %v3514_v5 = vcombine.high %v172_v63, %v176_v0  ;;  %v3925_v8 = vld [vmem:[#allocation10 + $0x2e4] ss:$16 sps:$4 sm:$0xff]   ;;  %v3995_v59 = vld [vmem:[#allocation10 + $0x360] ss:$16 sps:$4 sm:$0xff]  }
  0xa2   :  { %v4000_v60 = vld [vmem:[#allocation10 + $0x144] ss:$16 sps:$4 sm:$0xff]  }
  0xa4   :  { %1016 = vmatpush1.bf16.msra.mxu0 %v3447_v9  ;;  %1059 = vmatpush1.bf16.msra.mxu1 %v3449_v12  ;;  %v3513_v9 = vcombine.low %v172_v63, %v176_v0  ;;  %v3928_v12 = vld [vmem:[#allocation10 + $0xc4] ss:$16 sps:$4 sm:$0xff]   ;;  %v4001_v63 = vld [vmem:[#allocation10 + $0x340] ss:$16 sps:$4 sm:$0xff]  }
  0xa5   :  { %1017 = vmatprep.subr.bf16.mxu0 %v3568_v13  ;;  %1060 = vmatprep.subr.bf16.mxu1 %v3570_v17  ;;  %v3931_v13 = vld [vmem:[#allocation10 + $0x2c4] ss:$16 sps:$4 sm:$0xff]  }
  0xa6   :  { %v3934_v17 = vld [vmem:[#allocation10 + $0xa4] ss:$16 sps:$4 sm:$0xff]  }
  0xa7   :  { %v4006_v0 = vld [vmem:[#allocation10 + $0x124] ss:$16 sps:$4 sm:$0xff]  }
  0xa8   :  { %1018 = vmatpush2.bf16.msra.mxu0 %v3567_v18  ;;  %1061 = vmatpush2.bf16.msra.mxu1 %v3569_v21  ;;  %v3937_v18 = vld [vmem:[#allocation10 + $0x2a4] ss:$16 sps:$4 sm:$0xff]  }
  0xa9   :  { %1019 = vmatprep.subr.bf16.mxu0 %v3560_v22  ;;  %1062 = vmatprep.subr.bf16.mxu1 %v3562_v25  ;;  %v3940_v21 = vld [vmem:[#allocation10 + $0x84] ss:$16 sps:$4 sm:$0xff]  }
  0xaa   :  { %v3943_v22 = vld [vmem:[#allocation10 + $0x284] ss:$16 sps:$4 sm:$0xff]  }
  0xab   :  { %v3949_v25 = vld [vmem:[#allocation10 + $0x264] ss:$16 sps:$4 sm:$0xff]  }
  0xac   :  { %1020 = vmatpush2.bf16.msra.mxu0 %v3559_v26  ;;  %1063 = vmatpush2.bf16.msra.mxu1 %v3561_v29  ;;  %v3944_v26 = vld [vmem:[#allocation10 + $0x60] ss:$16 sps:$4 sm:$0xff]   ;;  %v3955_v29 = vld [vmem:[#allocation10 + $0x244] ss:$16 sps:$4 sm:$0xff]  }
  0xad   :  { %1021 = vmatprep.subr.bf16.mxu0 %v3552_v30  ;;  %1064 = vmatprep.subr.bf16.mxu1 %v3554_v33  ;;  %v3950_v30 = vld [vmem:[#allocation10 + $0x40] ss:$16 sps:$4 sm:$0xff]   ;;  %v3961_v33 = vld [vmem:[#allocation10 + $0x224] ss:$16 sps:$4 sm:$0xff]  }
  0xb0   :  { %1022 = vmatpush2.bf16.msra.mxu0 %v3551_v34  ;;  %1065 = vmatpush2.bf16.msra.mxu1 %v3553_v37  ;;  %v3956_v34 = vld [vmem:[#allocation10 + $0x20] ss:$16 sps:$4 sm:$0xff]   ;;  %v3967_v37 = vld [vmem:[#allocation10 + $0x204] ss:$16 sps:$4 sm:$0xff]  }
  0xb1   :  { %1023 = vmatprep.subr.bf16.mxu0 %v3544_v38  ;;  %1066 = vmatprep.subr.bf16.mxu1 %v3546_v41  ;;  %v3962_v38 = vld [vmem:[#allocation10] ss:$16 sps:$4 sm:$0xff]   ;;  %v3973_v41 = vld [vmem:[#allocation10 + $0x3e4] ss:$16 sps:$4 sm:$0xff]  }
  0xb4   :  { %1024 = vmatpush2.bf16.msra.mxu0 %v3543_v42  ;;  %1067 = vmatpush2.bf16.msra.mxu1 %v3545_v58  ;;  %v3968_v42 = vld [vmem:[#allocation10 + $0x1e0] ss:$16 sps:$4 sm:$0xff]   ;;  %v3979_v58 = vld [vmem:[#allocation10 + $0x3c4] ss:$16 sps:$4 sm:$0xff]  }
  0xb5   :  { %1025 = vmatprep.subr.bf16.mxu0 %v3536_v45  ;;  %1068 = vmatprep.subr.bf16.mxu1 %v3538_v48  ;;  %v3974_v45 = vld [vmem:[#allocation10 + $0x1c0] ss:$16 sps:$4 sm:$0xff]   ;;  %v3985_v48 = vld [vmem:[#allocation10 + $0x3a4] ss:$16 sps:$4 sm:$0xff]  }
  0xb8   :  { %1026 = vmatpush2.bf16.msra.mxu0 %v3535_v49  ;;  %1069 = vmatpush2.bf16.msra.mxu1 %v3537_v52  ;;  %v3980_v49 = vld [vmem:[#allocation10 + $0x1a0] ss:$16 sps:$4 sm:$0xff]   ;;  %v3991_v52 = vld [vmem:[#allocation10 + $0x384] ss:$16 sps:$4 sm:$0xff]  }
  0xb9   :  { %1027 = vmatprep.subr.bf16.mxu0 %v3528_v53  ;;  %1070 = vmatprep.subr.bf16.mxu1 %v3530_v56  ;;  %v3986_v53 = vld [vmem:[#allocation10 + $0x180] ss:$16 sps:$4 sm:$0xff]   ;;  %v3997_v56 = vld [vmem:[#allocation10 + $0x364] ss:$16 sps:$4 sm:$0xff]  }
  0xbc   :  { %1028 = vmatpush2.bf16.msra.mxu0 %v3527_v57  ;;  %1071 = vmatpush2.bf16.msra.mxu1 %v3529_v61  ;;  %v3992_v57 = vld [vmem:[#allocation10 + $0x160] ss:$16 sps:$4 sm:$0xff]   ;;  %v4003_v61 = vld [vmem:[#allocation10 + $0x344] ss:$16 sps:$4 sm:$0xff]  }
  0xbd   :  { %1029 = vmatprep.subr.bf16.mxu0 %v3520_v62  ;;  %1072 = vmatprep.subr.bf16.mxu1 %v3522_v1  ;;  %v3998_v62 = vld [vmem:[#allocation10 + $0x140] ss:$16 sps:$4 sm:$0xff]   ;;  %v4009_v1 = vld [vmem:[#allocation10 + $0x324] ss:$16 sps:$4 sm:$0xff]  }
  0xc0   :  { %1030 = vmatpush2.bf16.msra.mxu0 %v3519_v2  ;;  %1073 = vmatpush2.bf16.msra.mxu1 %v3521_v3  ;;  %v4004_v2 = vld [vmem:[#allocation10 + $0x120] ss:$16 sps:$4 sm:$0xff]  }
  0xc1   :  { %1031 = vmatprep.subr.bf16.mxu0 %v3512_v4  ;;  %1074 = vmatprep.subr.bf16.mxu1 %v3514_v5  ;;  %v4007_v3 = vld [vmem:[#allocation10 + $0x320] ss:$16 sps:$4 sm:$0xff]   ;;  %v4012_v4 = vld [vmem:[#allocation10 + $0x104] ss:$16 sps:$4 sm:$0xff]  }
  0xc2   :  { %v4015_v5 = vld [vmem:[#allocation10 + $0x304] ss:$16 sps:$4 sm:$0xff]  }
  0xc4   :  { %1032 = vmatpush2.bf16.msra.mxu0 %v3511_v7  ;;  %1075 = vmatpush2.bf16.msra.mxu1 %v3513_v9  ;;  %v4013_v7 = vld [vmem:[#allocation10 + $0x300] ss:$16 sps:$4 sm:$0xff]   ;;  %v4021_v9 = vld [vmem:[#allocation10 + $0x6e4] ss:$16 sps:$4 sm:$0xff]  }
  0xc5   :  { %2703 = vmatprep.subr.bf16.mxu0 %v3922_v6  ;;  %2746 = vmatprep.subr.bf16.mxu1 %v3925_v8  ;;  %v4010_v6 = vld [vmem:[#allocation10 + $0x100] ss:$16 sps:$4 sm:$0xff]   ;;  %v4018_v8 = vld [vmem:[#allocation10 + $0x4e4] ss:$16 sps:$4 sm:$0xff]  }
  0xc7   :  { %1034 = vmatmul.mubr.bf16.vlgmr.msra.gmra.mxu0 %v4556_v14  ;;  %1077 = vmatmul.mubr.bf16.vlgmr.msra.gmra.mxu1 %v4556_v14  ;;  %v3946_v14 = vld [vmem:[#allocation10 + $0x64] ss:$16 sps:$4 sm:$0xff]  }
  0xc8   :  { %2704 = vmatpush1.bf16.msra.mxu0 %v3920_v10  ;;  %2747 = vmatpush1.bf16.msra.mxu1 %v3923_v11  ;;  %v235_v10 = vlaneseq }
  0xc9   :  { %2705 = vmatprep.subr.bf16.mxu0 %v3928_v12  ;;  %2748 = vmatprep.subr.bf16.mxu1 %v3931_v13  ;;  %v4567_v13 = vld [vmem:[#allocation9] sm:$0xff] }
  0xca   :  { %v4564_v11 = vshrl.u32 %v235_v10, 7  ;;  %v4040_v10 = vld [vmem:[#allocation10 + $0x460] ss:$16 sps:$4 sm:$0xff]  }
  0xcc   :  { %2706 = vmatpush1.bf16.msra.mxu0 %v3926_v15  ;;  %2749 = vmatpush1.bf16.msra.mxu1 %v3929_v16  ;;  %v237_v12 = vsub.s32 0, %v4564_v11  ;;  %v241_v15 = vsub.s32 1, %v4564_v11  ;;  %v249_v16 = vsub.s32 3, %v4564_v11 }
  0xcd   :  { %2707 = vmatprep.subr.bf16.mxu0 %v3934_v17  ;;  %2750 = vmatprep.subr.bf16.mxu1 %v3937_v18  ;;  %v245_v17 = vsub.s32 2, %v4564_v11 }
  0xce   :  { %v238_v18 = vrot.slane %v4567_v13, %v237_v12 }
  0xd0   :  { %2708 = vmatpush1.bf16.msra.mxu0 %v3932_v19  ;;  %2751 = vmatpush1.bf16.msra.mxu1 %v3935_v20  ;;  %v242_v19 = vrot.slane %v4567_v13, %v241_v15 }
  0xd1   :  { %2709 = vmatprep.subr.bf16.mxu0 %v3940_v21  ;;  %2752 = vmatprep.subr.bf16.mxu1 %v3943_v22  ;;  %v250_v21 = vrot.slane %v4567_v13, %v249_v16  ;;  %v246_v22 = vrot.slane %v4567_v13, %v245_v17 }
  0xd4   :  { %2710 = vmatpush1.bf16.msra.mxu0 %v3938_v23  ;;  %2753 = vmatpush1.bf16.msra.mxu1 %v3941_v24 }
  0xd5   :  { %2711 = vmatprep.subr.bf16.mxu0 %v3946_v14  ;;  %2754 = vmatprep.subr.bf16.mxu1 %v3949_v25  ;;  %v4584_v25 = vstv %s1103_s3 }
  0xd8   :  { %2712 = vmatpush1.bf16.msra.mxu0 %v3944_v26  ;;  %2755 = vmatpush1.bf16.msra.mxu1 %v3947_v27 }
  0xd9   :  { %2713 = vmatprep.subr.bf16.mxu0 %v3952_v28  ;;  %2756 = vmatprep.subr.bf16.mxu1 %v3955_v29 }
  0xdc   :  { %2714 = vmatpush1.bf16.msra.mxu0 %v3950_v30  ;;  %2757 = vmatpush1.bf16.msra.mxu1 %v3953_v31 }
  0xdd   :  { %2715 = vmatprep.subr.bf16.mxu0 %v3958_v32  ;;  %2758 = vmatprep.subr.bf16.mxu1 %v3961_v33 }
  0xe0   :  { %2716 = vmatpush1.bf16.msra.mxu0 %v3956_v34  ;;  %2759 = vmatpush1.bf16.msra.mxu1 %v3959_v35 }
  0xe1   :  { %2717 = vmatprep.subr.bf16.mxu0 %v3964_v36  ;;  %2760 = vmatprep.subr.bf16.mxu1 %v3967_v37 }
  0xe4   :  { %2718 = vmatpush1.bf16.msra.mxu0 %v3962_v38  ;;  %2761 = vmatpush1.bf16.msra.mxu1 %v3965_v39 }
  0xe5   :  { %2719 = vmatprep.subr.bf16.mxu0 %v3970_v40  ;;  %2762 = vmatprep.subr.bf16.mxu1 %v3973_v41 }
  0xe8   :  { %2720 = vmatpush2.bf16.msra.mxu0 %v3968_v42  ;;  %2763 = vmatpush2.bf16.msra.mxu1 %v3971_v43 }
  0xe9   :  { %2721 = vmatprep.subr.bf16.mxu0 %v3976_v44  ;;  %2764 = vmatprep.subr.bf16.mxu1 %v3979_v58 }
  0xec   :  { %2722 = vmatpush2.bf16.msra.mxu0 %v3974_v45  ;;  %2765 = vmatpush2.bf16.msra.mxu1 %v3977_v46 }
  0xed   :  { %2723 = vmatprep.subr.bf16.mxu0 %v3982_v47  ;;  %2766 = vmatprep.subr.bf16.mxu1 %v3985_v48 }
  0xf0   :  { %2724 = vmatpush2.bf16.msra.mxu0 %v3980_v49  ;;  %2767 = vmatpush2.bf16.msra.mxu1 %v3983_v50 }
  0xf1   :  { %2725 = vmatprep.subr.bf16.mxu0 %v3988_v51  ;;  %2768 = vmatprep.subr.bf16.mxu1 %v3991_v52 }
  0xf4   :  { %2726 = vmatpush2.bf16.msra.mxu0 %v3986_v53  ;;  %2769 = vmatpush2.bf16.msra.mxu1 %v3989_v54  ;;  %v4016_v53 = vld [vmem:[#allocation10 + $0x4e0] ss:$16 sps:$4 sm:$0xff]  }
  0xf5   :  { %2727 = vmatprep.subr.bf16.mxu0 %v3994_v55  ;;  %2770 = vmatprep.subr.bf16.mxu1 %v3997_v56 }
  0xf8   :  { %2728 = vmatpush2.bf16.msra.mxu0 %v3992_v57  ;;  %2771 = vmatpush2.bf16.msra.mxu1 %v3995_v59  ;;  %v4019_v57 = vld [vmem:[#allocation10 + $0x6e0] ss:$16 sps:$4 sm:$0xff]   ;;  %v4024_v59 = vld [vmem:[#allocation10 + $0x4c4] ss:$16 sps:$4 sm:$0xff]  }
  0xf9   :  { %2729 = vmatprep.subr.bf16.mxu0 %v4000_v60  ;;  %2772 = vmatprep.subr.bf16.mxu1 %v4003_v61  ;;  %v4027_v61 = vld [vmem:[#allocation10 + $0x6c4] ss:$16 sps:$4 sm:$0xff]  }
  0xfc   :  { %2730 = vmatpush2.bf16.msra.mxu0 %v3998_v62  ;;  %2773 = vmatpush2.bf16.msra.mxu1 %v4001_v63  ;;  %v4022_v62 = vld [vmem:[#allocation10 + $0x4c0] ss:$16 sps:$4 sm:$0xff]  }
  0xfd   :  { %2731 = vmatprep.subr.bf16.mxu0 %v4006_v0  ;;  %2774 = vmatprep.subr.bf16.mxu1 %v4009_v1  ;;  %v4025_v63 = vld [vmem:[#allocation10 + $0x6c0] ss:$16 sps:$4 sm:$0xff]   ;;  %v4030_v0 = vld [vmem:[#allocation10 + $0x4a4] ss:$16 sps:$4 sm:$0xff]  }
  0xfe   :  { %v4033_v1 = vld [vmem:[#allocation10 + $0x6a4] ss:$16 sps:$4 sm:$0xff]  }
 0x100   :  { %2732 = vmatpush2.bf16.msra.mxu0 %v4004_v2  ;;  %2775 = vmatpush2.bf16.msra.mxu1 %v4007_v3  ;;  %v4028_v2 = vld [vmem:[#allocation10 + $0x4a0] ss:$16 sps:$4 sm:$0xff]  }
 0x101   :  { %2733 = vmatprep.subr.bf16.mxu0 %v4012_v4  ;;  %2776 = vmatprep.subr.bf16.mxu1 %v4015_v5  ;;  %v4031_v3 = vld [vmem:[#allocation10 + $0x6a0] ss:$16 sps:$4 sm:$0xff]   ;;  %v4036_v4 = vld [vmem:[#allocation10 + $0x484] ss:$16 sps:$4 sm:$0xff]  }
 0x102   :  { %v4039_v5 = vld [vmem:[#allocation10 + $0x684] ss:$16 sps:$4 sm:$0xff]  }
 0x104   :  { %2734 = vmatpush2.bf16.msra.mxu0 %v4010_v6  ;;  %2777 = vmatpush2.bf16.msra.mxu1 %v4013_v7  ;;  %v4034_v6 = vld [vmem:[#allocation10 + $0x480] ss:$16 sps:$4 sm:$0xff]  }
 0x105   :  { %2789 = vmatprep.subr.bf16.mxu0 %v4018_v8  ;;  %2832 = vmatprep.subr.bf16.mxu1 %v4021_v9  ;;  %v4037_v7 = vld [vmem:[#allocation10 + $0x680] ss:$16 sps:$4 sm:$0xff]   ;;  %v4042_v8 = vld [vmem:[#allocation10 + $0x464] ss:$16 sps:$4 sm:$0xff]  }
 0x106   :  { %v4045_v9 = vld [vmem:[#allocation10 + $0x664] ss:$16 sps:$4 sm:$0xff]  }
 0x147   :  { %v949_v20 = vpop.f32.mrf.mxu0  ;;  %v992_v23 = vpop.f32.mrf.mxu1 }
 0x148   :  { %v950_v24 = vadd.f32 %v949_v20, %v238_v18  ;;  %v993_v30 = vadd.f32 %v992_v23, %v246_v22  ;;  %v4051_v20 = vld [vmem:[#allocation10 + $0x644] ss:$16 sps:$4 sm:$0xff]  }
 0x149   :  { %v951_v14 = vpop.f32.mrf.mxu0  ;;  %v994_v27 = vpop.f32.mrf.mxu1  ;;  %v4054_v23 = vld [vmem:[#allocation10 + $0x424] ss:$16 sps:$4 sm:$0xff]  }
 0x14a   :  { %v952_v26 = vadd.f32 %v951_v14, %v242_v19  ;;  %v995_v28 = vadd.f32 %v994_v27, %v250_v21  ;;  %vm1087_vm0 = vcmp.ge.f32.partialorder %v950_v24, 0.0  ;;  %v1105_v33 = vmul.f32 %v4584_v25, %v950_v24  ;;  %v4052_v14 = vld [vmem:[#allocation10 + $0x420] ss:$16 sps:$4 sm:$0xff]   ;;  %v4060_v27 = vld [vmem:[#allocation10 + $0x404] ss:$16 sps:$4 sm:$0xff]  }
 0x14b   :  { %v953_v29 = vpop.f32.mrf.mxu0  ;;  %v996_v32 = vpop.f32.mrf.mxu1  ;;  %v1107_v43 = vmul.f32 %v4584_v25, %v993_v30  ;;  %vm1089_vm6 = vcmp.ge.f32.partialorder %v993_v30, 0.0 }
 0x14c   :  { %v954_v31 = vadd.f32 %v953_v29, %v238_v18  ;;  %vm1088_vm1 = vcmp.ge.f32.partialorder %v952_v26, 0.0  ;;  %v997_v34 = vadd.f32 %v996_v32, %v246_v22  ;;  %v1106_v36 = vmul.f32 %v4584_v25, %v952_v26  ;;  %v4043_v18 = vld [vmem:[#allocation10 + $0x660] ss:$16 sps:$4 sm:$0xff]   ;;  %v4069_v32 = vld [vmem:[#allocation10 + $0x7e4] ss:$16 sps:$4 sm:$0xff]  }
 0x14d   :  { %v955_v35 = vpop.f32.mrf.mxu0  ;;  %v998_v39 = vpop.f32.mrf.mxu1  ;;  %v1108_v40 = vmul.f32 %v4584_v25, %v995_v28  ;;  %vm1090_vm4 = vcmp.ge.f32.partialorder %v995_v28, 0.0  ;;  %v1121_v49 = vsel %vm1087_vm0, %v950_v24, %v1105_v33  ;;  %v1123_v54 = vsel %vm1089_vm6, %v993_v30, %v1107_v43  ;;  %v4049_v22 = vld [vmem:[#allocation10 + $0x640] ss:$16 sps:$4 sm:$0xff]   ;;  %v4057_v24 = vld [vmem:[#allocation10 + $0x624] ss:$16 sps:$4 sm:$0xff]  }
 0x14e   :  { %vm1095_vm2 = vcmp.ge.f32.partialorder %v954_v31, 0.0  ;;  %v1113_v37 = vmul.f32 %v4584_v25, %v954_v31  ;;  %v956_v38 = vadd.f32 %v955_v35, %v242_v19  ;;  %vm1097_vm3 = vcmp.ge.f32.partialorder %v997_v34, 0.0  ;;  %v4048_v19 = vld [vmem:[#allocation10 + $0x444] ss:$16 sps:$4 sm:$0xff]   ;;  %v4058_v29 = vld [vmem:[#allocation10 + $0x400] ss:$16 sps:$4 sm:$0xff]  }
 0x14f   :  { %v1115_v41 = vmul.f32 %v4584_v25, %v997_v34  ;;  %v999_v42 = vadd.f32 %v998_v39, %v250_v21  ;;  %v1122_v47 = vsel %vm1088_vm1, %v952_v26, %v1106_v36  ;;  %v1124_v51 = vsel %vm1090_vm4, %v995_v28, %v1108_v40  ;;  %v4046_v21 = vld [vmem:[#allocation10 + $0x440] ss:$16 sps:$4 sm:$0xff]   ;;  %v4063_v28 = vld [vmem:[#allocation10 + $0x604] ss:$16 sps:$4 sm:$0xff]  }
 0x150   :  { %vm1096_vm5 = vcmp.ge.f32.partialorder %v956_v38, 0.0  ;;  %v1114_v44 = vmul.f32 %v4584_v25, %v956_v38  ;;  %v1129_v58 = vsel %vm1095_vm2, %v954_v31, %v1113_v37  ;;  %v4055_v26 = vld [vmem:[#allocation10 + $0x620] ss:$16 sps:$4 sm:$0xff]   ;;  %v4066_v31 = vld [vmem:[#allocation10 + $0x5e4] ss:$16 sps:$4 sm:$0xff]  }
 0x151   :  { %vm1098_vm7 = vcmp.ge.f32.partialorder %v999_v42, 0.0  ;;  %v1116_v45 = vmul.f32 %v4584_v25, %v999_v42  ;;  %v1131_v46 = vsel %vm1097_vm3, %v997_v34, %v1115_v41  ;;  %v4598_v55 = vpack.c.bf16 %v1129_v58, %v1121_v49  ;;  %v4061_v30 = vld [vmem:[#allocation10 + $0x600] ss:$16 sps:$4 sm:$0xff]   ;;  %v4072_v35 = vld [vmem:[#allocation10 + $0x5c4] ss:$16 sps:$4 sm:$0xff]  }
 0x152   :  { %v1130_v48 = vsel %vm1096_vm5, %v956_v38, %v1114_v44  ;;  %v4602_v60 = vpack.c.bf16 %v1131_v46, %v1123_v54  ;;  %v4064_v33 = vld [vmem:[#allocation10 + $0x5e0] ss:$16 sps:$4 sm:$0xff]   ;;  %v4075_v36 = vld [vmem:[#allocation10 + $0x7c4] ss:$16 sps:$4 sm:$0xff]   ;;  %v257_v49 = vsub.s32 5, %v4564_v11  ;;  %v261_v54 = vsub.s32 6, %v4564_v11 }
 0x153   :  { %v4596_v50 = vpack.c.bf16 %v1130_v48, %v1122_v47  ;;  %v1132_v52 = vsel %vm1098_vm7, %v999_v42, %v1116_v45  ;;  %v4067_v34 = vld [vmem:[#allocation10 + $0x7e0] ss:$16 sps:$4 sm:$0xff]   ;;  %v4078_v39 = vld [vmem:[#allocation10 + $0x5a4] ss:$16 sps:$4 sm:$0xff]   ;;  %v253_v48 = vsub.s32 4, %v4564_v11 }
 0x154   :  { %v4600_v56 = vpack.c.bf16 %v1132_v52, %v1124_v51  ;;  %v4070_v37 = vld [vmem:[#allocation10 + $0x5c0] ss:$16 sps:$4 sm:$0xff]   ;;  %v4081_v40 = vld [vmem:[#allocation10 + $0x7a4] ss:$16 sps:$4 sm:$0xff]   ;;  %v265_v52 = vsub.s32 7, %v4564_v11 }
 0x155   :  { %2735 = vmatprep.mubr.bf16.mxu0 %v4596_v50  ;;  %v4073_v38 = vld [vmem:[#allocation10 + $0x7c0] ss:$16 sps:$4 sm:$0xff]   ;;  %v4084_v43 = vld [vmem:[#allocation10 + $0x584] ss:$16 sps:$4 sm:$0xff]  }
 0x156   :  { %2778 = vmatprep.mubr.bf16.mxu1 %v4600_v56  ;;  %2736 = vmatmul.mubr.bf16.vlgmr.msra.gmra.mxu0 %v4598_v55  ;;  %v4076_v41 = vld [vmem:[#allocation10 + $0x5a0] ss:$16 sps:$4 sm:$0xff]   ;;  %v4087_v44 = vld [vmem:[#allocation10 + $0x784] ss:$16 sps:$4 sm:$0xff]  }
 0x157   :  { %2779 = vmatmul.mubr.bf16.vlgmr.msra.gmra.mxu1 %v4602_v60  ;;  %2790 = vmatpush1.bf16.msra.mxu0 %v4016_v53  ;;  %v4079_v42 = vld [vmem:[#allocation10 + $0x7a0] ss:$16 sps:$4 sm:$0xff]   ;;  %v4090_v46 = vld [vmem:[#allocation10 + $0x564] ss:$16 sps:$4 sm:$0xff]  }
 0x158   :  { %2833 = vmatpush1.bf16.msra.mxu1 %v4019_v57  ;;  %2791 = vmatprep.subr.bf16.mxu0 %v4024_v59  ;;  %v4082_v58 = vld [vmem:[#allocation10 + $0x580] ss:$16 sps:$4 sm:$0xff]   ;;  %v4093_v47 = vld [vmem:[#allocation10 + $0x764] ss:$16 sps:$4 sm:$0xff]   ;;  %v254_v59 = vrot.slane %v4567_v13, %v253_v48 }
 0x159   :  { %2834 = vmatprep.subr.bf16.mxu1 %v4027_v61  ;;  %v4085_v45 = vld [vmem:[#allocation10 + $0x780] ss:$16 sps:$4 sm:$0xff]   ;;  %v4096_v57 = vld [vmem:[#allocation10 + $0x544] ss:$16 sps:$4 sm:$0xff]  }
 0x15a   :  { %v4088_v51 = vld [vmem:[#allocation10 + $0x560] ss:$16 sps:$4 sm:$0xff]   ;;  %v4099_v61 = vld [vmem:[#allocation10 + $0x744] ss:$16 sps:$4 sm:$0xff]  }
 0x15b   :  { %2792 = vmatpush1.bf16.msra.mxu0 %v4022_v62  ;;  %v4091_v53 = vld [vmem:[#allocation10 + $0x760] ss:$16 sps:$4 sm:$0xff]   ;;  %v258_v62 = vrot.slane %v4567_v13, %v257_v49 }
 0x15c   :  { %2835 = vmatpush1.bf16.msra.mxu1 %v4025_v63  ;;  %2793 = vmatprep.subr.bf16.mxu0 %v4030_v0  ;;  %v266_v0 = vrot.slane %v4567_v13, %v265_v52 }
 0x15d   :  { %2836 = vmatprep.subr.bf16.mxu1 %v4033_v1  ;;  %v4094_v1 = vld [vmem:[#allocation10 + $0x540] ss:$16 sps:$4 sm:$0xff]  }
 0x15f   :  { %2794 = vmatpush1.bf16.msra.mxu0 %v4028_v2  ;;  %v262_v2 = vrot.slane %v4567_v13, %v261_v54  ;;  %v4103_v13 = vld [vmem:[#allocation10 + $0x720] ss:$16 sps:$4 sm:$0xff]   ;;  %v4115_v54 = vld [vmem:[#allocation10 + $0x2e8] ss:$16 sps:$4 sm:$0xff]  }
 0x160   :  { %2837 = vmatpush1.bf16.msra.mxu1 %v4031_v3  ;;  %2795 = vmatprep.subr.bf16.mxu0 %v4036_v4  ;;  %v4097_v4 = vld [vmem:[#allocation10 + $0x740] ss:$16 sps:$4 sm:$0xff]  }
 0x161   :  { %2838 = vmatprep.subr.bf16.mxu1 %v4039_v5  ;;  %v4102_v5 = vld [vmem:[#allocation10 + $0x524] ss:$16 sps:$4 sm:$0xff]  }
 0x163   :  { %2796 = vmatpush1.bf16.msra.mxu0 %v4034_v6 }
 0x164   :  { %2839 = vmatpush1.bf16.msra.mxu1 %v4037_v7  ;;  %2797 = vmatprep.subr.bf16.mxu0 %v4042_v8  ;;  %v4105_v8 = vld [vmem:[#allocation10 + $0x724] ss:$16 sps:$4 sm:$0xff]  }
 0x165   :  { %2840 = vmatprep.subr.bf16.mxu1 %v4045_v9 }
 0x167   :  { %2798 = vmatpush1.bf16.msra.mxu0 %v4040_v10 }
 0x168   :  { %2841 = vmatpush1.bf16.msra.mxu1 %v4043_v18  ;;  %2799 = vmatprep.subr.bf16.mxu0 %v4048_v19 }
 0x169   :  { %2842 = vmatprep.subr.bf16.mxu1 %v4051_v20  ;;  %v4100_v20 = vld [vmem:[#allocation10 + $0x520] ss:$16 sps:$4 sm:$0xff]  }
 0x16b   :  { %2800 = vmatpush1.bf16.msra.mxu0 %v4046_v21 }
 0x16c   :  { %2843 = vmatpush1.bf16.msra.mxu1 %v4049_v22  ;;  %2801 = vmatprep.subr.bf16.mxu0 %v4054_v23 }
 0x16d   :  { %2844 = vmatprep.subr.bf16.mxu1 %v4057_v24  ;;  %v4108_v24 = vld [vmem:[#allocation10 + $0x504] ss:$16 sps:$4 sm:$0xff]  }
 0x16f   :  { %2802 = vmatpush1.bf16.msra.mxu0 %v4052_v14 }
 0x170   :  { %2845 = vmatpush1.bf16.msra.mxu1 %v4055_v26  ;;  %2803 = vmatprep.subr.bf16.mxu0 %v4060_v27 }
 0x171   :  { %2846 = vmatprep.subr.bf16.mxu1 %v4063_v28  ;;  %v4111_v28 = vld [vmem:[#allocation10 + $0x704] ss:$16 sps:$4 sm:$0xff]  }
 0x173   :  { %2804 = vmatpush1.bf16.msra.mxu0 %v4058_v29 }
 0x174   :  { %2847 = vmatpush1.bf16.msra.mxu1 %v4061_v30  ;;  %2805 = vmatprep.subr.bf16.mxu0 %v4066_v31 }
 0x175   :  { %2848 = vmatprep.subr.bf16.mxu1 %v4069_v32 }
 0x177   :  { %2806 = vmatpush2.bf16.msra.mxu0 %v4064_v33 }
 0x178   :  { %2849 = vmatpush2.bf16.msra.mxu1 %v4067_v34  ;;  %2807 = vmatprep.subr.bf16.mxu0 %v4072_v35 }
 0x179   :  { %2850 = vmatprep.subr.bf16.mxu1 %v4075_v36  ;;  %v4106_v36 = vld [vmem:[#allocation10 + $0x500] ss:$16 sps:$4 sm:$0xff]  }
 0x17b   :  { %2808 = vmatpush2.bf16.msra.mxu0 %v4070_v37 }
 0x17c   :  { %2851 = vmatpush2.bf16.msra.mxu1 %v4073_v38  ;;  %2809 = vmatprep.subr.bf16.mxu0 %v4078_v39  ;;  %v4109_v39 = vld [vmem:[#allocation10 + $0x700] ss:$16 sps:$4 sm:$0xff]  }
 0x17d   :  { %2852 = vmatprep.subr.bf16.mxu1 %v4081_v40  ;;  %v4114_v40 = vld [vmem:[#allocation10 + $0xec] ss:$16 sps:$4 sm:$0xff]  }
 0x17f   :  { %2810 = vmatpush2.bf16.msra.mxu0 %v4076_v41 }
 0x180   :  { %2853 = vmatpush2.bf16.msra.mxu1 %v4079_v42  ;;  %2811 = vmatprep.subr.bf16.mxu0 %v4084_v43  ;;  %v4117_v43 = vld [vmem:[#allocation10 + $0x2ec] ss:$16 sps:$4 sm:$0xff]  }
 0x181   :  { %2854 = vmatprep.subr.bf16.mxu1 %v4087_v44 }
 0x183   :  { %2812 = vmatpush2.bf16.msra.mxu0 %v4082_v58 }
 0x184   :  { %2855 = vmatpush2.bf16.msra.mxu1 %v4085_v45  ;;  %2813 = vmatprep.subr.bf16.mxu0 %v4090_v46 }
 0x185   :  { %2856 = vmatprep.subr.bf16.mxu1 %v4093_v47 }
 0x187   :  { %2814 = vmatpush2.bf16.msra.mxu0 %v4088_v51  ;;  %v1035_v63 = vpop.f32.mrf.mxu0  ;;  %v1078_v3 = vpop.f32.mrf.mxu1  ;;  %v4112_v51 = vld [vmem:[#allocation10 + $0xe8] ss:$16 sps:$4 sm:$0xff]  }
 0x188   :  { %2857 = vmatpush2.bf16.msra.mxu1 %v4091_v53  ;;  %2815 = vmatprep.subr.bf16.mxu0 %v4096_v57  ;;  %v1036_v6 = vadd.f32 %v1035_v63, %v254_v59  ;;  %v1079_v21 = vadd.f32 %v1078_v3, %v262_v2  ;;  %v4121_v63 = vld [vmem:[#allocation10 + $0x2c8] ss:$16 sps:$4 sm:$0xff]  }
 0x189   :  { %v1037_v7 = vpop.f32.mrf.mxu0  ;;  %2858 = vmatprep.subr.bf16.mxu1 %v4099_v61  ;;  %v1080_v10 = vpop.f32.mrf.mxu1  ;;  %v4123_v61 = vld [vmem:[#allocation10 + $0x2cc] ss:$16 sps:$4 sm:$0xff]   ;;  %v4127_v3 = vld [vmem:[#allocation10 + $0x2a8] ss:$16 sps:$4 sm:$0xff]  }
 0x18a   :  { %v1038_v9 = vadd.f32 %v1037_v7, %v258_v62  ;;  %v1081_v18 = vadd.f32 %v1080_v10, %v266_v0  ;;  %vm1091_vm8 = vcmp.ge.f32.partialorder %v1036_v6, 0.0  ;;  %v1109_v14 = vmul.f32 %v4584_v25, %v1036_v6  ;;  %v4138_v7 = vld [vmem:[#allocation10 + $0x6c] ss:$16 sps:$4 sm:$0xff]  }
 0x18b   :  { %2816 = vmatpush2.bf16.msra.mxu0 %v4094_v1  ;;  %v1039_v19 = vpop.f32.mrf.mxu0  ;;  %v1082_v23 = vpop.f32.mrf.mxu1  ;;  %v1111_v37 = vmul.f32 %v4584_v25, %v1079_v21  ;;  %vm1093_vm14 = vcmp.ge.f32.partialorder %v1079_v21, 0.0  ;;  %v4129_v1 = vld [vmem:[#allocation10 + $0x2ac] ss:$16 sps:$4 sm:$0xff]  }
 0x18c   :  { %2859 = vmatpush2.bf16.msra.mxu1 %v4097_v4  ;;  %v1040_v22 = vadd.f32 %v1039_v19, %v254_v59  ;;  %2817 = vmatprep.subr.bf16.mxu0 %v4102_v5  ;;  %vm1092_vm9 = vcmp.ge.f32.partialorder %v1038_v9, 0.0  ;;  %v1083_v26 = vadd.f32 %v1082_v23, %v262_v2  ;;  %v1110_v29 = vmul.f32 %v4584_v25, %v1038_v9  ;;  %v4120_v59 = vld [vmem:[#allocation10 + $0xcc] ss:$16 sps:$4 sm:$0xff]   ;;  %v4124_v2 = vld [vmem:[#allocation10 + $0xa8] ss:$16 sps:$4 sm:$0xff]  }
 0x18d   :  { %v1041_v27 = vpop.f32.mrf.mxu0  ;;  %2860 = vmatprep.subr.bf16.mxu1 %v4105_v8  ;;  %v1084_v32 = vpop.f32.mrf.mxu1  ;;  %v1112_v33 = vmul.f32 %v4584_v25, %v1081_v18  ;;  %vm1094_vm12 = vcmp.ge.f32.partialorder %v1081_v18, 0.0  ;;  %v1125_v46 = vsel %vm1091_vm8, %v1036_v6, %v1109_v14  ;;  %v1127_v52 = vsel %vm1093_vm14, %v1079_v21, %v1111_v37  ;;  %v4132_v4 = vld [vmem:[#allocation10 + $0x8c] ss:$16 sps:$4 sm:$0xff]   ;;  %v4130_v6 = vld [vmem:[#allocation10 + $0x88] ss:$16 sps:$4 sm:$0xff]  }
 0x18e   :  { %vm1099_vm10 = vcmp.ge.f32.partialorder %v1040_v22, 0.0  ;;  %v1117_v30 = vmul.f32 %v4584_v25, %v1040_v22  ;;  %v1042_v31 = vadd.f32 %v1041_v27, %v258_v62  ;;  %vm1101_vm11 = vcmp.ge.f32.partialorder %v1083_v26, 0.0  ;;  %v4118_v62 = vld [vmem:[#allocation10 + $0xc8] ss:$16 sps:$4 sm:$0xff]   ;;  %v4135_v5 = vld [vmem:[#allocation10 + $0x28c] ss:$16 sps:$4 sm:$0xff]  }
 0x18f   :  { %v1119_v34 = vmul.f32 %v4584_v25, %v1083_v26  ;;  %v1085_v35 = vadd.f32 %v1084_v32, %v266_v0  ;;  %2818 = vmatpush2.bf16.msra.mxu0 %v4100_v20  ;;  %v1126_v58 = vsel %vm1092_vm9, %v1038_v9, %v1110_v29  ;;  %v1128_v48 = vsel %vm1094_vm12, %v1081_v18, %v1112_v33  ;;  %v4126_v0 = vld [vmem:[#allocation10 + $0xac] ss:$16 sps:$4 sm:$0xff]   ;;  %v4139_v9 = vld [vmem:[#allocation10 + $0x268] ss:$16 sps:$4 sm:$0xff]  }
 0x190   :  { %vm1100_vm13 = vcmp.ge.f32.partialorder %v1042_v31, 0.0  ;;  %v1118_v38 = vmul.f32 %v4584_v25, %v1042_v31  ;;  %2861 = vmatpush2.bf16.msra.mxu1 %v4103_v13  ;;  %2819 = vmatprep.subr.bf16.mxu0 %v4108_v24  ;;  %v1133_v41 = vsel %vm1099_vm10, %v1040_v22, %v1117_v30  ;;  %v4141_v8 = vld [vmem:[#allocation10 + $0x26c] ss:$16 sps:$4 sm:$0xff]   ;;  %v4142_v19 = vld [vmem:[#allocation10 + $0x48] ss:$16 sps:$4 sm:$0xff]  }
 0x191   :  { %vm1102_vm15 = vcmp.ge.f32.partialorder %v1085_v35, 0.0  ;;  %v1120_v42 = vmul.f32 %v4584_v25, %v1085_v35  ;;  %2862 = vmatprep.subr.bf16.mxu1 %v4111_v28  ;;  %v1135_v44 = vsel %vm1101_vm11, %v1083_v26, %v1119_v34  ;;  %v4631_v53 = vpack.c.bf16 %v1133_v41, %v1125_v46  ;;  %v4144_v10 = vld [vmem:[#allocation10 + $0x4c] ss:$16 sps:$4 sm:$0xff]   ;;  %v4145_v20 = vld [vmem:[#allocation10 + $0x248] ss:$16 sps:$4 sm:$0xff]  }
 0x192   :  { %v1134_v45 = vsel %vm1100_vm13, %v1042_v31, %v1118_v38  ;;  %v4635_v57 = vpack.c.bf16 %v1135_v44, %v1127_v52  ;;  %v4147_v18 = vld [vmem:[#allocation10 + $0x24c] ss:$16 sps:$4 sm:$0xff]   ;;  %v4148_v23 = vld [vmem:[#allocation10 + $0x28] ss:$16 sps:$4 sm:$0xff]  }
 0x193   :  { %2820 = vmatpush2.bf16.msra.mxu0 %v4106_v36  ;;  %v4628_v47 = vpack.c.bf16 %v1134_v45, %v1126_v58  ;;  %v1136_v49 = vsel %vm1102_vm15, %v1085_v35, %v1120_v42  ;;  %v4150_v21 = vld [vmem:[#allocation10 + $0x2c] ss:$16 sps:$4 sm:$0xff]   ;;  %v4151_v13 = vld [vmem:[#allocation10 + $0x228] ss:$16 sps:$4 sm:$0xff]  }
 0x194   :  { %2863 = vmatpush2.bf16.msra.mxu1 %v4109_v39  ;;  %v4633_v25 = vpack.c.bf16 %v1136_v49, %v1128_v48  ;;  %2875 = vmatprep.subr.bf16.mxu0 %v4114_v40  ;;  %v4153_v22 = vld [vmem:[#allocation10 + $0x22c] ss:$16 sps:$4 sm:$0xff]   ;;  %v4154_v26 = vld [vmem:[#allocation10 + $0x8] ss:$16 sps:$4 sm:$0xff]  }
 0x195   :  { %2821 = vmatprep.mubr.bf16.mxu0 %v4628_v47  ;;  %2918 = vmatprep.subr.bf16.mxu1 %v4117_v43  ;;  %v4156_v24 = vld [vmem:[#allocation10 + $0xc] ss:$16 sps:$4 sm:$0xff]   ;;  %v4157_v27 = vld [vmem:[#allocation10 + $0x208] ss:$16 sps:$4 sm:$0xff]  }
 0x196   :  { %2864 = vmatprep.mubr.bf16.mxu1 %v4633_v25  ;;  %2822 = vmatmul.mubr.bf16.vlgmr.msra.gmra.mxu0 %v4631_v53  ;;  %v4159_v14 = vld [vmem:[#allocation10 + $0x20c] ss:$16 sps:$4 sm:$0xff]   ;;  %v4160_v30 = vld [vmem:[#allocation10 + $0x1e8] ss:$16 sps:$4 sm:$0xff]  }
 0x197   :  { %2865 = vmatmul.mubr.bf16.vlgmr.msra.gmra.mxu1 %v4635_v57  ;;  %2876 = vmatpush1.bf16.msra.mxu0 %v4112_v51  ;;  %v4162_v28 = vld [vmem:[#allocation10 + $0x1ec] ss:$16 sps:$4 sm:$0xff]   ;;  %v4163_v31 = vld [vmem:[#allocation10 + $0x3e8] ss:$16 sps:$4 sm:$0xff]  }
 0x198   :  { %2919 = vmatpush1.bf16.msra.mxu1 %v4115_v54  ;;  %2907 = vmatprep.mubr.bf16.mxu0 %v4596_v50  ;;  %v4133_v50 = vld [vmem:[#allocation10 + $0x288] ss:$16 sps:$4 sm:$0xff]   ;;  %v4165_v29 = vld [vmem:[#allocation10 + $0x3ec] ss:$16 sps:$4 sm:$0xff]  }
 0x199   :  { %2950 = vmatprep.mubr.bf16.mxu1 %v4600_v56  ;;  %2877 = vmatprep.subr.bf16.mxu0 %v4120_v59  ;;  %v4136_v56 = vld [vmem:[#allocation10 + $0x68] ss:$16 sps:$4 sm:$0xff]   ;;  %v4168_v32 = vld [vmem:[#allocation10 + $0x1cc] ss:$16 sps:$4 sm:$0xff]  }
 0x19a   :  { %2920 = vmatprep.subr.bf16.mxu1 %v4123_v61  ;;  %v4171_v33 = vld [vmem:[#allocation10 + $0x3cc] ss:$16 sps:$4 sm:$0xff]   ;;  %v4166_v34 = vld [vmem:[#allocation10 + $0x1c8] ss:$16 sps:$4 sm:$0xff]  }
 0x19b   :  { %2878 = vmatpush1.bf16.msra.mxu0 %v4118_v62  ;;  %v4169_v35 = vld [vmem:[#allocation10 + $0x3c8] ss:$16 sps:$4 sm:$0xff]   ;;  %v4174_v36 = vld [vmem:[#allocation10 + $0x1ac] ss:$16 sps:$4 sm:$0xff]  }
 0x19c   :  { %2921 = vmatpush1.bf16.msra.mxu1 %v4121_v63  ;;  %2879 = vmatprep.subr.bf16.mxu0 %v4126_v0  ;;  %v4177_v37 = vld [vmem:[#allocation10 + $0x3ac] ss:$16 sps:$4 sm:$0xff]   ;;  %v4172_v38 = vld [vmem:[#allocation10 + $0x1a8] ss:$16 sps:$4 sm:$0xff]  }
 0x19d   :  { %2922 = vmatprep.subr.bf16.mxu1 %v4129_v1  ;;  %v4175_v39 = vld [vmem:[#allocation10 + $0x3a8] ss:$16 sps:$4 sm:$0xff]   ;;  %v4180_v40 = vld [vmem:[#allocation10 + $0x18c] ss:$16 sps:$4 sm:$0xff]  }
 0x19e   :  { %v4183_v41 = vld [vmem:[#allocation10 + $0x38c] ss:$16 sps:$4 sm:$0xff]   ;;  %v4178_v42 = vld [vmem:[#allocation10 + $0x188] ss:$16 sps:$4 sm:$0xff]  }
 0x19f   :  { %2880 = vmatpush1.bf16.msra.mxu0 %v4124_v2  ;;  %v4181_v43 = vld [vmem:[#allocation10 + $0x388] ss:$16 sps:$4 sm:$0xff]   ;;  %v4186_v44 = vld [vmem:[#allocation10 + $0x16c] ss:$16 sps:$4 sm:$0xff]  }
 0x1a0   :  { %2923 = vmatpush1.bf16.msra.mxu1 %v4127_v3  ;;  %2881 = vmatprep.subr.bf16.mxu0 %v4132_v4  ;;  %v4189_v58 = vld [vmem:[#allocation10 + $0x36c] ss:$16 sps:$4 sm:$0xff]   ;;  %v4184_v45 = vld [vmem:[#allocation10 + $0x168] ss:$16 sps:$4 sm:$0xff]  }
 0x1a1   :  { %2924 = vmatprep.subr.bf16.mxu1 %v4135_v5  ;;  %v4187_v46 = vld [vmem:[#allocation10 + $0x368] ss:$16 sps:$4 sm:$0xff]   ;;  %v4192_v48 = vld [vmem:[#allocation10 + $0x14c] ss:$16 sps:$4 sm:$0xff]  }
 0x1a2   :  { %v4195_v49 = vld [vmem:[#allocation10 + $0x34c] ss:$16 sps:$4 sm:$0xff]   ;;  %v4190_v51 = vld [vmem:[#allocation10 + $0x148] ss:$16 sps:$4 sm:$0xff]  }
 0x1a3   :  { %2882 = vmatpush1.bf16.msra.mxu0 %v4130_v6  ;;  %v4193_v52 = vld [vmem:[#allocation10 + $0x348] ss:$16 sps:$4 sm:$0xff]   ;;  %v4198_v54 = vld [vmem:[#allocation10 + $0x12c] ss:$16 sps:$4 sm:$0xff]  }
 0x1a4   :  { %2925 = vmatpush1.bf16.msra.mxu1 %v4133_v50  ;;  %2883 = vmatprep.subr.bf16.mxu0 %v4138_v7  ;;  %v4201_v59 = vld [vmem:[#allocation10 + $0x32c] ss:$16 sps:$4 sm:$0xff]   ;;  %v4196_v61 = vld [vmem:[#allocation10 + $0x128] ss:$16 sps:$4 sm:$0xff]  }
 0x1a5   :  { %2926 = vmatprep.subr.bf16.mxu1 %v4141_v8  ;;  %v4199_v62 = vld [vmem:[#allocation10 + $0x328] ss:$16 sps:$4 sm:$0xff]   ;;  %v4204_v63 = vld [vmem:[#allocation10 + $0x10c] ss:$16 sps:$4 sm:$0xff]  }
 0x1a6   :  { %v4207_v0 = vld [vmem:[#allocation10 + $0x30c] ss:$16 sps:$4 sm:$0xff]   ;;  %v4202_v1 = vld [vmem:[#allocation10 + $0x108] ss:$16 sps:$4 sm:$0xff]  }
 0x1a7   :  { %2884 = vmatpush1.bf16.msra.mxu0 %v4136_v56  ;;  %v4205_v2 = vld [vmem:[#allocation10 + $0x308] ss:$16 sps:$4 sm:$0xff]   ;;  %v4210_v3 = vld [vmem:[#allocation10 + $0x4ec] ss:$16 sps:$4 sm:$0xff]  }
 0x1a8   :  { %2927 = vmatpush1.bf16.msra.mxu1 %v4139_v9  ;;  %2885 = vmatprep.subr.bf16.mxu0 %v4144_v10  ;;  %v4213_v4 = vld [vmem:[#allocation10 + $0x6ec] ss:$16 sps:$4 sm:$0xff]   ;;  %v4208_v5 = vld [vmem:[#allocation10 + $0x4e8] ss:$16 sps:$4 sm:$0xff]  }
 0x1a9   :  { %2928 = vmatprep.subr.bf16.mxu1 %v4147_v18  ;;  %v4211_v6 = vld [vmem:[#allocation10 + $0x6e8] ss:$16 sps:$4 sm:$0xff]   ;;  %v4216_v50 = vld [vmem:[#allocation10 + $0x4cc] ss:$16 sps:$4 sm:$0xff]  }
 0x1aa   :  { %v4219_v7 = vld [vmem:[#allocation10 + $0x6cc] ss:$16 sps:$4 sm:$0xff]   ;;  %v4214_v8 = vld [vmem:[#allocation10 + $0x4c8] ss:$16 sps:$4 sm:$0xff]  }
 0x1ab   :  { %2886 = vmatpush1.bf16.msra.mxu0 %v4142_v19  ;;  %v4217_v56 = vld [vmem:[#allocation10 + $0x6c8] ss:$16 sps:$4 sm:$0xff]   ;;  %v4222_v9 = vld [vmem:[#allocation10 + $0x4ac] ss:$16 sps:$4 sm:$0xff]  }
 0x1ac   :  { %2929 = vmatpush1.bf16.msra.mxu1 %v4145_v20  ;;  %2887 = vmatprep.subr.bf16.mxu0 %v4150_v21  ;;  %v4225_v10 = vld [vmem:[#allocation10 + $0x6ac] ss:$16 sps:$4 sm:$0xff]   ;;  %v4220_v18 = vld [vmem:[#allocation10 + $0x4a8] ss:$16 sps:$4 sm:$0xff]  }
 0x1ad   :  { %2930 = vmatprep.subr.bf16.mxu1 %v4153_v22  ;;  %v4228_v19 = vld [vmem:[#allocation10 + $0x48c] ss:$16 sps:$4 sm:$0xff]   ;;  %v4226_v20 = vld [vmem:[#allocation10 + $0x488] ss:$16 sps:$4 sm:$0xff]  }
 0x1ae   :  { %v4234_v21 = vld [vmem:[#allocation10 + $0x46c] ss:$16 sps:$4 sm:$0xff]  }
 0x1af   :  { %2888 = vmatpush1.bf16.msra.mxu0 %v4148_v23  ;;  %v4237_v22 = vld [vmem:[#allocation10 + $0x66c] ss:$16 sps:$4 sm:$0xff]   ;;  %v4235_v23 = vld [vmem:[#allocation10 + $0x668] ss:$16 sps:$4 sm:$0xff]  }
 0x1b0   :  { %2931 = vmatpush1.bf16.msra.mxu1 %v4151_v13  ;;  %2889 = vmatprep.subr.bf16.mxu0 %v4156_v24  ;;  %v4240_v13 = vld [vmem:[#allocation10 + $0x44c] ss:$16 sps:$4 sm:$0xff]  }
 0x1b1   :  { %2932 = vmatprep.subr.bf16.mxu1 %v4159_v14  ;;  %v4243_v24 = vld [vmem:[#allocation10 + $0x64c] ss:$16 sps:$4 sm:$0xff]   ;;  %v4238_v14 = vld [vmem:[#allocation10 + $0x448] ss:$16 sps:$4 sm:$0xff]  }
 0x1b3   :  { %2890 = vmatpush1.bf16.msra.mxu0 %v4154_v26  ;;  %v4241_v26 = vld [vmem:[#allocation10 + $0x648] ss:$16 sps:$4 sm:$0xff]  }
 0x1b4   :  { %2933 = vmatpush1.bf16.msra.mxu1 %v4157_v27  ;;  %2891 = vmatprep.subr.bf16.mxu0 %v4162_v28  ;;  %v4246_v27 = vld [vmem:[#allocation10 + $0x42c] ss:$16 sps:$4 sm:$0xff]  }
 0x1b5   :  { %2934 = vmatprep.subr.bf16.mxu1 %v4165_v29  ;;  %v4249_v28 = vld [vmem:[#allocation10 + $0x62c] ss:$16 sps:$4 sm:$0xff]   ;;  %v4244_v29 = vld [vmem:[#allocation10 + $0x428] ss:$16 sps:$4 sm:$0xff]  }
 0x1b7   :  { %2892 = vmatpush2.bf16.msra.mxu0 %v4160_v30  ;;  %v4247_v30 = vld [vmem:[#allocation10 + $0x628] ss:$16 sps:$4 sm:$0xff]  }
 0x1b8   :  { %2935 = vmatpush2.bf16.msra.mxu1 %v4163_v31  ;;  %2893 = vmatprep.subr.bf16.mxu0 %v4168_v32  ;;  %v4252_v31 = vld [vmem:[#allocation10 + $0x40c] ss:$16 sps:$4 sm:$0xff]  }
 0x1b9   :  { %2936 = vmatprep.subr.bf16.mxu1 %v4171_v33  ;;  %v4255_v32 = vld [vmem:[#allocation10 + $0x60c] ss:$16 sps:$4 sm:$0xff]   ;;  %v4250_v33 = vld [vmem:[#allocation10 + $0x408] ss:$16 sps:$4 sm:$0xff]  }
 0x1bb   :  { %2894 = vmatpush2.bf16.msra.mxu0 %v4166_v34  ;;  %v4253_v34 = vld [vmem:[#allocation10 + $0x608] ss:$16 sps:$4 sm:$0xff]  }
 0x1bc   :  { %2937 = vmatpush2.bf16.msra.mxu1 %v4169_v35  ;;  %2895 = vmatprep.subr.bf16.mxu0 %v4174_v36  ;;  %v4258_v35 = vld [vmem:[#allocation10 + $0x5ec] ss:$16 sps:$4 sm:$0xff]  }
 0x1bd   :  { %2938 = vmatprep.subr.bf16.mxu1 %v4177_v37  ;;  %v4261_v36 = vld [vmem:[#allocation10 + $0x7ec] ss:$16 sps:$4 sm:$0xff]   ;;  %v4256_v37 = vld [vmem:[#allocation10 + $0x5e8] ss:$16 sps:$4 sm:$0xff]  }
 0x1bf   :  { %2896 = vmatpush2.bf16.msra.mxu0 %v4172_v38  ;;  %v4259_v38 = vld [vmem:[#allocation10 + $0x7e8] ss:$16 sps:$4 sm:$0xff]  }
 0x1c0   :  { %2939 = vmatpush2.bf16.msra.mxu1 %v4175_v39  ;;  %2897 = vmatprep.subr.bf16.mxu0 %v4180_v40  ;;  %v4264_v39 = vld [vmem:[#allocation10 + $0x5cc] ss:$16 sps:$4 sm:$0xff]  }
 0x1c1   :  { %2940 = vmatprep.subr.bf16.mxu1 %v4183_v41  ;;  %v4267_v40 = vld [vmem:[#allocation10 + $0x7cc] ss:$16 sps:$4 sm:$0xff]   ;;  %v4262_v41 = vld [vmem:[#allocation10 + $0x5c8] ss:$16 sps:$4 sm:$0xff]  }
 0x1c3   :  { %2898 = vmatpush2.bf16.msra.mxu0 %v4178_v42  ;;  %v4265_v42 = vld [vmem:[#allocation10 + $0x7c8] ss:$16 sps:$4 sm:$0xff]  }
 0x1c4   :  { %2941 = vmatpush2.bf16.msra.mxu1 %v4181_v43  ;;  %2899 = vmatprep.subr.bf16.mxu0 %v4186_v44  ;;  %v4270_v43 = vld [vmem:[#allocation10 + $0x5ac] ss:$16 sps:$4 sm:$0xff]  }
 0x1c5   :  { %2942 = vmatprep.subr.bf16.mxu1 %v4189_v58  ;;  %v4273_v44 = vld [vmem:[#allocation10 + $0x7ac] ss:$16 sps:$4 sm:$0xff]   ;;  %v4268_v58 = vld [vmem:[#allocation10 + $0x5a8] ss:$16 sps:$4 sm:$0xff]  }
 0x1c7   :  { %2900 = vmatpush2.bf16.msra.mxu0 %v4184_v45  ;;  %v4271_v45 = vld [vmem:[#allocation10 + $0x7a8] ss:$16 sps:$4 sm:$0xff]  }
 0x1c8   :  { %2943 = vmatpush2.bf16.msra.mxu1 %v4187_v46  ;;  %2901 = vmatprep.subr.bf16.mxu0 %v4192_v48  ;;  %v4276_v46 = vld [vmem:[#allocation10 + $0x58c] ss:$16 sps:$4 sm:$0xff]  }
 0x1c9   :  { %2944 = vmatprep.subr.bf16.mxu1 %v4195_v49  ;;  %v4279_v48 = vld [vmem:[#allocation10 + $0x78c] ss:$16 sps:$4 sm:$0xff]   ;;  %v4274_v49 = vld [vmem:[#allocation10 + $0x588] ss:$16 sps:$4 sm:$0xff]  }
 0x1cb   :  { %2902 = vmatpush2.bf16.msra.mxu0 %v4190_v51  ;;  %v4277_v51 = vld [vmem:[#allocation10 + $0x788] ss:$16 sps:$4 sm:$0xff]  }
 0x1cc   :  { %2945 = vmatpush2.bf16.msra.mxu1 %v4193_v52  ;;  %2903 = vmatprep.subr.bf16.mxu0 %v4198_v54  ;;  %v4282_v52 = vld [vmem:[#allocation10 + $0x56c] ss:$16 sps:$4 sm:$0xff]  }
 0x1cd   :  { %2946 = vmatprep.subr.bf16.mxu1 %v4201_v59  ;;  %v4285_v54 = vld [vmem:[#allocation10 + $0x76c] ss:$16 sps:$4 sm:$0xff]   ;;  %v4280_v59 = vld [vmem:[#allocation10 + $0x568] ss:$16 sps:$4 sm:$0xff]  }
 0x1cf   :  { %2904 = vmatpush2.bf16.msra.mxu0 %v4196_v61  ;;  %v4283_v61 = vld [vmem:[#allocation10 + $0x768] ss:$16 sps:$4 sm:$0xff]  }
 0x1d0   :  { %2947 = vmatpush2.bf16.msra.mxu1 %v4199_v62  ;;  %2905 = vmatprep.subr.bf16.mxu0 %v4204_v63  ;;  %v4288_v62 = vld [vmem:[#allocation10 + $0x54c] ss:$16 sps:$4 sm:$0xff]  }
 0x1d1   :  { %2948 = vmatprep.subr.bf16.mxu1 %v4207_v0  ;;  %v4291_v63 = vld [vmem:[#allocation10 + $0x74c] ss:$16 sps:$4 sm:$0xff]   ;;  %v4286_v0 = vld [vmem:[#allocation10 + $0x548] ss:$16 sps:$4 sm:$0xff]  }
 0x1d3   :  { %2906 = vmatpush2.bf16.msra.mxu0 %v4202_v1  ;;  %v4289_v1 = vld [vmem:[#allocation10 + $0x748] ss:$16 sps:$4 sm:$0xff]  }
 0x1d4   :  { %2949 = vmatpush2.bf16.msra.mxu1 %v4205_v2  ;;  %2961 = vmatprep.subr.bf16.mxu0 %v4210_v3  ;;  %v4294_v2 = vld [vmem:[#allocation10 + $0x52c] ss:$16 sps:$4 sm:$0xff]  }
 0x1d5   :  { %3004 = vmatprep.subr.bf16.mxu1 %v4213_v4  ;;  %v4297_v3 = vld [vmem:[#allocation10 + $0x72c] ss:$16 sps:$4 sm:$0xff]   ;;  %v4292_v4 = vld [vmem:[#allocation10 + $0x528] ss:$16 sps:$4 sm:$0xff]  }
 0x1d6   :  { %2908 = vmatmul.mubr.bf16.vlgmr.msra.gmra.mxu0 %v4598_v55  ;;  %v4223_v55 = vld [vmem:[#allocation10 + $0x6a8] ss:$16 sps:$4 sm:$0xff]  }
 0x1d7   :  { %2951 = vmatmul.mubr.bf16.vlgmr.msra.gmra.mxu1 %v4602_v60  ;;  %2962 = vmatpush1.bf16.msra.mxu0 %v4208_v5  ;;  %v4231_v60 = vld [vmem:[#allocation10 + $0x68c] ss:$16 sps:$4 sm:$0xff]   ;;  %v4295_v5 = vld [vmem:[#allocation10 + $0x728] ss:$16 sps:$4 sm:$0xff]  }
 0x1d8   :  { %2993 = vmatprep.mubr.bf16.mxu0 %v4628_v47  ;;  %3005 = vmatpush1.bf16.msra.mxu1 %v4211_v6  ;;  %v4229_v47 = vld [vmem:[#allocation10 + $0x688] ss:$16 sps:$4 sm:$0xff]   ;;  %v4300_v6 = vld [vmem:[#allocation10 + $0x50c] ss:$16 sps:$4 sm:$0xff]  }
 0x1d9   :  { %3036 = vmatprep.mubr.bf16.mxu1 %v4633_v25  ;;  %2963 = vmatprep.subr.bf16.mxu0 %v4216_v50  ;;  %v4232_v25 = vld [vmem:[#allocation10 + $0x468] ss:$16 sps:$4 sm:$0xff]   ;;  %v4303_v50 = vld [vmem:[#allocation10 + $0x70c] ss:$16 sps:$4 sm:$0xff]  }
 0x1da   :  { %3006 = vmatprep.subr.bf16.mxu1 %v4219_v7  ;;  %v4298_v7 = vld [vmem:[#allocation10 + $0x508] ss:$16 sps:$4 sm:$0xff]  }
 0x1db   :  { %2964 = vmatpush1.bf16.msra.mxu0 %v4214_v8  ;;  %v4301_v8 = vld [vmem:[#allocation10 + $0x708] ss:$16 sps:$4 sm:$0xff]  }
 0x1dc   :  { %3007 = vmatpush1.bf16.msra.mxu1 %v4217_v56  ;;  %2965 = vmatprep.subr.bf16.mxu0 %v4222_v9  ;;  %v4304_v56 = vld [vmem:[#allocation12 + $0x78] sm:$0xff]  }
 0x1dd   :  { %3008 = vmatprep.subr.bf16.mxu1 %v4225_v10  ;;  %v4305_v9 = vld [vmem:[#allocation12 + $0x38] sm:$0xff]   ;;  %v4306_v10 = vld [vmem:[#allocation12 + $0x70] sm:$0xff]  }
 0x1df   :  { %2966 = vmatpush1.bf16.msra.mxu0 %v4220_v18  ;;  %v4307_v18 = vld [vmem:[#allocation12 + $0x30] sm:$0xff]  }
 0x1e0   :  { %3009 = vmatpush1.bf16.msra.mxu1 %v4223_v55  ;;  %2967 = vmatprep.subr.bf16.mxu0 %v4228_v19  ;;  %v4308_v55 = vld [vmem:[#allocation12 + $0x68] sm:$0xff]  }
 0x1e1   :  { %3010 = vmatprep.subr.bf16.mxu1 %v4231_v60  ;;  %v4309_v19 = vld [vmem:[#allocation12 + $0x28] sm:$0xff]   ;;  %v4310_v60 = vld [vmem:[#allocation12 + $0x60] sm:$0xff]  }
 0x1e3   :  { %2968 = vmatpush1.bf16.msra.mxu0 %v4226_v20  ;;  %v4311_v20 = vld [vmem:[#allocation12 + $0x20] sm:$0xff]  }
 0x1e4   :  { %3011 = vmatpush1.bf16.msra.mxu1 %v4229_v47  ;;  %2969 = vmatprep.subr.bf16.mxu0 %v4234_v21  ;;  %v4320_v47 = vld [vmem:[#allocation12 + $0xf8] sm:$0xff]  }
 0x1e5   :  { %3012 = vmatprep.subr.bf16.mxu1 %v4237_v22  ;;  %v4321_v21 = vld [vmem:[#allocation12 + $0xb8] sm:$0xff]   ;;  %v4322_v22 = vld [vmem:[#allocation12 + $0xf0] sm:$0xff]  }
 0x1e7   :  { %2970 = vmatpush1.bf16.msra.mxu0 %v4232_v25  ;;  %v4312_v25 = vld [vmem:[#allocation12 + $0x58] sm:$0xff]  }
 0x1e8   :  { %3013 = vmatpush1.bf16.msra.mxu1 %v4235_v23  ;;  %2971 = vmatprep.subr.bf16.mxu0 %v4240_v13  ;;  %v4324_v23 = vld [vmem:[#allocation12 + $0xe8] sm:$0xff]   ;;  %v4314_v13 = vld [vmem:[#allocation12 + $0x50] sm:$0xff]  }
 0x1e9   :  { %3014 = vmatprep.subr.bf16.mxu1 %v4243_v24  ;;  %v4325_v24 = vld [vmem:[#allocation12 + $0xa8] sm:$0xff]  }
 0x1eb   :  { %2972 = vmatpush1.bf16.msra.mxu0 %v4238_v14  ;;  %v4315_v14 = vld [vmem:[#allocation12 + $0x10] sm:$0xff]  }
 0x1ec   :  { %3015 = vmatpush1.bf16.msra.mxu1 %v4241_v26  ;;  %2973 = vmatprep.subr.bf16.mxu0 %v4246_v27  ;;  %v4326_v26 = vld [vmem:[#allocation12 + $0xe0] sm:$0xff]   ;;  %v4316_v27 = vld [vmem:[#allocation12 + $0x48] sm:$0xff]  }
 0x1ed   :  { %3016 = vmatprep.subr.bf16.mxu1 %v4249_v28  ;;  %v4327_v28 = vld [vmem:[#allocation12 + $0xa0] sm:$0xff]  }
 0x1ef   :  { %2974 = vmatpush1.bf16.msra.mxu0 %v4244_v29  ;;  %v4317_v29 = vld [vmem:[#allocation12 + $0x8] sm:$0xff]  }
 0x1f0   :  { %3017 = vmatpush1.bf16.msra.mxu1 %v4247_v30  ;;  %2975 = vmatprep.subr.bf16.mxu0 %v4252_v31  ;;  %v4318_v30 = vld [vmem:[#allocation12 + $0x40] sm:$0xff]  }
 0x1f1   :  { %3018 = vmatprep.subr.bf16.mxu1 %v4255_v32  ;;  %v4319_v31 = vld [vmem:[#allocation12] sm:$0xff]  }
 0x1f3   :  { %2976 = vmatpush1.bf16.msra.mxu0 %v4250_v33 }
 0x1f4   :  { %3019 = vmatpush1.bf16.msra.mxu1 %v4253_v34  ;;  %2977 = vmatprep.subr.bf16.mxu0 %v4258_v35  ;;  %v4652_v34 = vld [vmem:[%s4687_s5] sm:$0xf]  ;;  %s3827_s5 = sld [smem:[#allocation3 + $0x1]] }
 0x1f5   :  { %3020 = vmatprep.subr.bf16.mxu1 %v4261_v36 }
 0x1f7   :  { %2978 = vmatpush2.bf16.msra.mxu0 %v4256_v37  ;;  %v1406_v37 = vrot.slane %v4652_v34, %v237_v12  ;;  %v4329_v12 = vld [vmem:[#allocation12 + $0x98] sm:$0xff]  }
 0x1f8   :  { %3021 = vmatpush2.bf16.msra.mxu1 %v4259_v38  ;;  %2979 = vmatprep.subr.bf16.mxu0 %v4264_v39  ;;  %v1410_v38 = vrot.slane %v4652_v34, %v241_v15 }
 0x1f9   :  { %3022 = vmatprep.subr.bf16.mxu1 %v4267_v40 }
 0x1fb   :  { %2980 = vmatpush2.bf16.msra.mxu0 %v4262_v41 }
 0x1fc   :  { %3023 = vmatpush2.bf16.msra.mxu1 %v4265_v42  ;;  %2981 = vmatprep.subr.bf16.mxu0 %v4270_v43 }
 0x1fd   :  { %3024 = vmatprep.subr.bf16.mxu1 %v4273_v44 }
 0x1ff   :  { %2982 = vmatpush2.bf16.msra.mxu0 %v4268_v58 }
 0x200   :  { %3025 = vmatpush2.bf16.msra.mxu1 %v4271_v45  ;;  %2983 = vmatprep.subr.bf16.mxu0 %v4276_v46 }
 0x201   :  { %3026 = vmatprep.subr.bf16.mxu1 %v4279_v48 }
 0x203   :  { %2984 = vmatpush2.bf16.msra.mxu0 %v4274_v49 }
 0x204   :  { %3027 = vmatpush2.bf16.msra.mxu1 %v4277_v51  ;;  %2985 = vmatprep.subr.bf16.mxu0 %v4282_v52  ;;  %v4328_v51 = vld [vmem:[#allocation12 + $0xd8] sm:$0xff]  }
 0x205   :  { %3028 = vmatprep.subr.bf16.mxu1 %v4285_v54 }
 0x207   :  { %2986 = vmatpush2.bf16.msra.mxu0 %v4280_v59 }
 0x208   :  { %3029 = vmatpush2.bf16.msra.mxu1 %v4283_v61  ;;  %2987 = vmatprep.subr.bf16.mxu0 %v4288_v62 }
 0x209   :  { %3030 = vmatprep.subr.bf16.mxu1 %v4291_v63 }
 0x20b   :  { %2988 = vmatpush2.bf16.msra.mxu0 %v4286_v0 }
 0x20c   :  { %3031 = vmatpush2.bf16.msra.mxu1 %v4289_v1  ;;  %2989 = vmatprep.subr.bf16.mxu0 %v4294_v2  ;;  %v4330_v2 = vld [vmem:[#allocation12 + $0xd0] sm:$0xff]  }
 0x20d   :  { %3032 = vmatprep.subr.bf16.mxu1 %v4297_v3 }
 0x20f   :  { %2990 = vmatpush2.bf16.msra.mxu0 %v4292_v4 }
 0x210   :  { %3033 = vmatpush2.bf16.msra.mxu1 %v4295_v5  ;;  %2991 = vmatprep.subr.bf16.mxu0 %v4300_v6  ;;  %v4331_v6 = vld [vmem:[#allocation12 + $0x90] sm:$0xff]  }
 0x211   :  { %3034 = vmatprep.subr.bf16.mxu1 %v4303_v50 }
 0x213   :  { %2992 = vmatpush2.bf16.msra.mxu0 %v4298_v7 }
 0x214   :  { %3035 = vmatpush2.bf16.msra.mxu1 %v4301_v8  ;;  %3861 = vmatprep.subr.bf16.mxu0 %v4304_v56  ;;  %v4660_v8 = vstv %s3827_s5 }
 0x215   :  { %3883 = vmatprep.subr.bf16.mxu1 %v4320_v47 }
 0x216   :  { %2994 = vmatmul.mubr.bf16.vlgmr.msra.gmra.mxu0 %v4631_v53  ;;  %v4323_v53 = vld [vmem:[#allocation12 + $0xb0] sm:$0xff]   ;;  %v2737_v32 = vpop.f32.mrf.mxu0 }
 0x217   :  { %3037 = vmatmul.mubr.bf16.vlgmr.msra.gmra.mxu1 %v4635_v57  ;;  %3862 = vmatpush3.bf16.msra.mxu0 %v4305_v9  ;;  %v4313_v57 = vld [vmem:[#allocation12 + $0x18] sm:$0xff]   ;;  %v2780_v33 = vpop.f32.mrf.mxu1  ;;  %v2738_v41 = vadd.f32 %v2737_v32, %v1406_v37 }
 0x218   :  { %3863 = vmatprep.subr.bf16.mxu0 %v4306_v10  ;;  %3884 = vmatpush3.bf16.msra.mxu1 %v4321_v21  ;;  %v2739_v35 = vpop.f32.mrf.mxu0  ;;  %v4334_v21 = vld [vmem:[#allocation12 + $0xc0] sm:$0xff]  }
 0x219   :  { %3885 = vmatprep.subr.bf16.mxu1 %v4322_v22  ;;  %v2782_v36 = vpop.f32.mrf.mxu1  ;;  %v2740_v42 = vadd.f32 %v2739_v35, %v1410_v38  ;;  %v2781_v46 = vadd.f32 %v2780_v33, %v2738_v41  ;;  %v4335_v22 = vld [vmem:[#allocation12 + $0x80] sm:$0xff]  }
 0x21a   :  { %v2741_v39 = vpop.f32.mrf.mxu0 }
 0x21b   :  { %3864 = vmatpush3.bf16.msra.mxu0 %v4307_v18  ;;  %v2784_v40 = vpop.f32.mrf.mxu1  ;;  %v2742_v44 = vadd.f32 %v2741_v39, %v1406_v37  ;;  %v2783_v48 = vadd.f32 %v2782_v36, %v2740_v42  ;;  %v4332_v18 = vld [vmem:[#allocation12 + $0xc8] sm:$0xff]  }
 0x21c   :  { %3865 = vmatprep.subr.bf16.mxu0 %v4308_v55  ;;  %3886 = vmatpush3.bf16.msra.mxu1 %v4323_v53  ;;  %v2743_v43 = vpop.f32.mrf.mxu0 }
 0x21d   :  { %3887 = vmatprep.subr.bf16.mxu1 %v4324_v23  ;;  %v2786_v58 = vpop.f32.mrf.mxu1  ;;  %v2744_v52 = vadd.f32 %v2743_v43, %v1410_v38  ;;  %v2785_v59 = vadd.f32 %v2784_v40, %v2742_v44 }
 0x21f   :  { %3866 = vmatpush3.bf16.msra.mxu0 %v4309_v19  ;;  %v2787_v3 = vadd.f32 %v2786_v58, %v2744_v52 }
 0x220   :  { %3867 = vmatprep.subr.bf16.mxu0 %v4310_v60  ;;  %3888 = vmatpush3.bf16.msra.mxu1 %v4325_v24  ;;  %v4333_v60 = vld [vmem:[#allocation12 + $0x88] sm:$0xff]  }
 0x221   :  { %3889 = vmatprep.subr.bf16.mxu1 %v4326_v26 }
 0x223   :  { %3868 = vmatpush3.bf16.msra.mxu0 %v4311_v20 }
 0x224   :  { %3869 = vmatprep.subr.bf16.mxu0 %v4312_v25  ;;  %3890 = vmatpush3.bf16.msra.mxu1 %v4327_v28 }
 0x225   :  { %3891 = vmatprep.subr.bf16.mxu1 %v4328_v51 }
 0x227   :  { %3870 = vmatpush3.bf16.msra.mxu0 %v4313_v57 }
 0x228   :  { %3871 = vmatprep.subr.bf16.mxu0 %v4314_v13  ;;  %3892 = vmatpush3.bf16.msra.mxu1 %v4329_v12 }
 0x229   :  { %3893 = vmatprep.subr.bf16.mxu1 %v4330_v2 }
 0x22b   :  { %3872 = vmatpush3.bf16.msra.mxu0 %v4315_v14 }
 0x22c   :  { %3873 = vmatprep.subr.bf16.mxu0 %v4316_v27  ;;  %3894 = vmatpush3.bf16.msra.mxu1 %v4331_v6 }
 0x22d   :  { %3895 = vmatprep.subr.bf16.mxu1 %v4332_v18 }
 0x22f   :  { %3874 = vmatpush3.bf16.msra.mxu0 %v4317_v29  ;;  %v1414_v29 = vrot.slane %v4652_v34, %v245_v17 }
 0x230   :  { %3875 = vmatprep.subr.bf16.mxu0 %v4318_v30  ;;  %3896 = vmatpush3.bf16.msra.mxu1 %v4333_v60  ;;  %v1418_v30 = vrot.slane %v4652_v34, %v249_v16 }
 0x231   :  { %3897 = vmatprep.subr.bf16.mxu1 %v4334_v21 }
 0x233   :  { %3876 = vmatpush3.bf16.msra.mxu0 %v4319_v31 }
 0x234   :  { %3898 = vmatpush3.bf16.msra.mxu1 %v4335_v22 }
 0x256   :  { %v2823_v45 = vpop.f32.mrf.mxu0 }
 0x257   :  { %v2866_v49 = vpop.f32.mrf.mxu1  ;;  %v2824_v61 = vadd.f32 %v2823_v45, %v2781_v46 }
 0x258   :  { %v2825_v54 = vpop.f32.mrf.mxu0 }
 0x259   :  { %v2826_v62 = vadd.f32 %v2825_v54, %v2783_v48  ;;  %v2868_v15 = vpop.f32.mrf.mxu1  ;;  %v2867_v50 = vadd.f32 %v2866_v49, %v2824_v61 }
 0x25a   :  { %v2827_v63 = vpop.f32.mrf.mxu0 }
 0x25b   :  { %v2828_v0 = vadd.f32 %v2827_v63, %v2785_v59  ;;  %v2870_v1 = vpop.f32.mrf.mxu1  ;;  %v2869_v4 = vadd.f32 %v2868_v15, %v2826_v62  ;;  %v3057_v20 = vmul.f32 %v4660_v8, %v2867_v50  ;;  %vm3047_vm2 = vcmp.ge.f32.partialorder %v2867_v50, 0.0 }
 0x25c   :  { %v2829_v5 = vpop.f32.mrf.mxu0 }
 0x25d   :  { %v2871_v7 = vadd.f32 %v2870_v1, %v2828_v0  ;;  %v2830_v56 = vadd.f32 %v2829_v5, %v2787_v3  ;;  %v2872_v10 = vpop.f32.mrf.mxu1  ;;  %v3058_v55 = vmul.f32 %v4660_v8, %v2869_v4  ;;  %vm3048_vm1 = vcmp.ge.f32.partialorder %v2869_v4, 0.0 }
 0x25e   :  { %v3065_v23 = vsel %vm3047_vm2, %v2867_v50, %v3057_v20 }
 0x25f   :  { %v3061_v9 = vmul.f32 %v4660_v8, %v2871_v7  ;;  %vm3051_vm0 = vcmp.ge.f32.partialorder %v2871_v7, 0.0  ;;  %v2873_v19 = vadd.f32 %v2872_v10, %v2830_v56  ;;  %v3066_v53 = vsel %vm3048_vm1, %v2869_v4, %v3058_v55  ;;  %v3828_v10 = vld [vmem:[%s4689_s7] ss:$0 sm:$0xff] }
 0x261   :  { %vm3052_vm3 = vcmp.ge.f32.partialorder %v2873_v19, 0.0  ;;  %v3062_v47 = vmul.f32 %v4660_v8, %v2873_v19  ;;  %v3069_v25 = vsel %vm3051_vm0, %v2871_v7, %v3061_v9 }
 0x262   :  { %v3073_v24 = vpack.c.bf16 %v3069_v25, %v3065_v23 }
 0x263   :  { %v3070_v57 = vsel %vm3052_vm3, %v2873_v19, %v3062_v47 }
 0x264   :  { %v3074_v13 = vpack.c.bf16 %v3070_v57, %v3066_v53 }
 0x266   :  { %3372 = vmatprep.mubr.bf16.mxu0 %v3074_v13 }
 0x267   :  { %3373 = vmatmul.mubr.bf16.vlgmr.msra.gmra.mxu0 %v3073_v24 }
 0x296   :  { %v2909_v14 = vpop.f32.mrf.mxu0 }
 0x297   :  { %v2952_v26 = vpop.f32.mrf.mxu1  ;;  %v2910_v33 = vadd.f32 %v2909_v14, %v1414_v29 }
 0x298   :  { %v2911_v27 = vpop.f32.mrf.mxu0 }
 0x299   :  { %v2954_v28 = vpop.f32.mrf.mxu1  ;;  %v2912_v35 = vadd.f32 %v2911_v27, %v1418_v30  ;;  %v2953_v40 = vadd.f32 %v2952_v26, %v2910_v33 }
 0x29a   :  { %v2913_v31 = vpop.f32.mrf.mxu0 }
 0x29b   :  { %v2956_v32 = vpop.f32.mrf.mxu1  ;;  %v2914_v37 = vadd.f32 %v2913_v31, %v1414_v29  ;;  %v2955_v41 = vadd.f32 %v2954_v28, %v2912_v35 }
 0x29c   :  { %v2915_v36 = vpop.f32.mrf.mxu0 }
 0x29d   :  { %v2958_v38 = vpop.f32.mrf.mxu1  ;;  %v2916_v43 = vadd.f32 %v2915_v36, %v1418_v30  ;;  %v2957_v58 = vadd.f32 %v2956_v32, %v2914_v37 }
 0x29f   :  { %v2959_v34 = vadd.f32 %v2958_v38, %v2916_v43 }
 0x2d6   :  { %v2995_v39 = vpop.f32.mrf.mxu0 }
 0x2d7   :  { %v3038_v42 = vpop.f32.mrf.mxu1  ;;  %v2996_v45 = vadd.f32 %v2995_v39, %v2953_v40 }
 0x2d8   :  { %v2997_v44 = vpop.f32.mrf.mxu0 }
 0x2d9   :  { %v2998_v17 = vadd.f32 %v2997_v44, %v2955_v41  ;;  %v3040_v46 = vpop.f32.mrf.mxu1  ;;  %v3039_v52 = vadd.f32 %v3038_v42, %v2996_v45 }
 0x2da   :  { %v2999_v11 = vpop.f32.mrf.mxu0 }
 0x2db   :  { %v3000_v48 = vadd.f32 %v2999_v11, %v2957_v58  ;;  %v3042_v16 = vpop.f32.mrf.mxu1  ;;  %v3041_v49 = vadd.f32 %v3040_v46, %v2998_v17  ;;  %v3059_v63 = vmul.f32 %v4660_v8, %v3039_v52  ;;  %vm3049_vm6 = vcmp.ge.f32.partialorder %v3039_v52, 0.0 }
 0x2dc   :  { %v3001_v51 = vpop.f32.mrf.mxu0 }
 0x2dd   :  { %v3043_v54 = vadd.f32 %v3042_v16, %v3000_v48  ;;  %v3002_v12 = vadd.f32 %v3001_v51, %v2959_v34  ;;  %v3044_v61 = vpop.f32.mrf.mxu1  ;;  %v3060_v62 = vmul.f32 %v4660_v8, %v3041_v49  ;;  %vm3050_vm5 = vcmp.ge.f32.partialorder %v3041_v49, 0.0 }
 0x2de   :  { %v3067_v4 = vsel %vm3049_vm6, %v3039_v52, %v3059_v63 }
 0x2df   :  { %v3063_v59 = vmul.f32 %v4660_v8, %v3043_v54  ;;  %vm3053_vm4 = vcmp.ge.f32.partialorder %v3043_v54, 0.0  ;;  %v3045_v15 = vadd.f32 %v3044_v61, %v3002_v12  ;;  %v3068_v2 = vsel %vm3050_vm5, %v3041_v49, %v3060_v62 }
 0x2e1   :  { %vm3054_vm7 = vcmp.ge.f32.partialorder %v3045_v15, 0.0  ;;  %v3064_v0 = vmul.f32 %v4660_v8, %v3045_v15  ;;  %v3071_v1 = vsel %vm3053_vm4, %v3043_v54, %v3063_v59 }
 0x2e2   :  { %v3075_v6 = vpack.c.bf16 %v3071_v1, %v3067_v4 }
 0x2e3   :  { %v3072_v3 = vsel %vm3054_vm7, %v3045_v15, %v3064_v0 }
 0x2e4   :  { %v3076_v5 = vpack.c.bf16 %v3072_v3, %v3068_v2 }
 0x2e6   :  { %3413 = vmatprep.mubr.bf16.mxu1 %v3076_v5 }
 0x2e7   :  { %3414 = vmatmul.mubr.bf16.vlgmr.msra.gmra.mxu1 %v3075_v6 }
 0x327   :  { %v3877_v50 = vpop.f32.mrf.mxu0 }
 0x329   :  { %v3878_v7 = vpop.f32.mrf.mxu0 }
 0x32a   :  { %v3879_v9 = vadd.f32 %v3878_v7, %v3877_v50 }
 0x32b   :  { %v3880_v56 = vpop.f32.mrf.mxu0 }
 0x32c   :  { %v3375_v8 = vadd.f32 %v3879_v9, %v3828_v10 }
 0x32d   :  { %v3881_v18 = vpop.f32.mrf.mxu0 }
 0x32e   :  { %v3882_v60 = vadd.f32 %v3881_v18, %v3880_v56 }
 0x330   :  { %v3378_v25 = vadd.f32 %v3882_v60, %v3828_v10 }
 0x3a7   :  { %v3899_v55 = vpop.f32.mrf.mxu1 }
 0x3a9   :  { %v3900_v19 = vpop.f32.mrf.mxu1 }
 0x3aa   :  { %v3901_v20 = vadd.f32 %v3900_v19, %v3899_v55 }
 0x3ab   :  { %v3902_v47 = vpop.f32.mrf.mxu1 }
 0x3ac   :  { %v3416_v21 = vadd.f32 %v3901_v20, %v3375_v8 }
 0x3ad   :  { %v3903_v22 = vpop.f32.mrf.mxu1 }
 0x3ae   :  { %3422 = vst [vmem:[#allocation13] sm:$0xff] %v3416_v21  ;;  %v3904_v53 = vadd.f32 %v3903_v22, %v3902_v47 }
 0x3b0   :  { %v3419_v57 = vadd.f32 %v3904_v53, %v3378_v25 }
 0x3b2   :  { %3423 = vst [vmem:[#allocation13 + $0x8] sm:$0xff] %v3419_v57 }
 0x3b3   :  { %4455 = shalt.err (!%p4452_p1)
}
 0x3b4   :  { %s4487_s7 = smov 128   ;;  %s4488_s18 = smov 8  }
 0x3b5   :  { %3435 = dma.vmem_to_hbm [thread:$0]  %s3430_s16, 256, %s4690_s8, [#allocation6], %s4487_s7, %s4487_s7, %s4488_s18  }
 0x3b6   :  { %4472 = dma.done.wait [#allocation6], 256  }
 0x3b7   :  { %4473 = vsyncadd [#allocation6], 4294967040 }
 0x3b8   :  { %3439 = vsyncpa [#allocation5], 1 }
 0x3b9   :  { %3440 = vsyncpa [#allocation8], 1 }
 0x3ba   :  { %3441 = vsyncpa [#allocation11], 1 }
 0x3bb   :  { %3442 = vsyncpa [#allocation6], 1 }

</bundles_post_ra>
